<compile_context>
chip_gen: v7x
topology: tpu7x:2x2x1
jax: 0.10.0
libtpu: 0.0.40
codegen_flags: <defaults>
</compile_context>

<pallas_src>
import math
import jax
import jax.numpy as jnp
from jax.experimental import pallas as pl
from jax.experimental.pallas import tpu as pltpu

D_MODEL = 32
N_HEADS = 4
D_FF = 64
D_K = D_MODEL // N_HEADS
LN_EPS = 1e-5


def _layernorm(x, gamma, beta):
    mean = jnp.mean(x, axis=-1, keepdims=True)
    var = jnp.mean((x - mean) ** 2, axis=-1, keepdims=True)
    return (x - mean) * jax.lax.rsqrt(var + LN_EPS) * gamma + beta


def _attention_block(residual, q_scaled, kv, wo, bo, gamma, beta, attn_ref):
    """Multi-head attention body with V == K (reference uses W_Q for Q/K/V).

    q_scaled is the Q projection already multiplied by 1/sqrt(d_k).
    Writes softmax probabilities as one lane-dense (Lq, H*Lk) store and
    returns LayerNorm(residual + W_O(ctx) + b_O).
    """
    proj = bo  # (1, D) -> broadcasts over query rows
    probs = []
    for h in range(N_HEADS):
        lo, hi = h * D_K, (h + 1) * D_K
        qh = q_scaled[:, lo:hi]                                    # (Lq, dk)
        kh = kv[:, lo:hi]                                          # (Lk, dk); v_h == k_h
        s = jnp.dot(qh, kh.T, preferred_element_type=jnp.float32)  # (Lq, Lk)
        # NOTE: attention mask intentionally NOT applied (reference bug:
        # `attn.masked_fill(...)` is out-of-place and its result is discarded).
        s = s - jnp.max(s, axis=-1, keepdims=True)
        e = jnp.exp(s)
        p = e / jnp.sum(e, axis=-1, keepdims=True)                 # (Lq, Lk)
        probs.append(p)
        ctx = jnp.dot(p, kh, preferred_element_type=jnp.float32)   # (Lq, dk)
        # concat-free output projection: accumulate ctx_h @ W_O[rows of head h]
        proj = proj + jnp.dot(ctx, wo[lo:hi, :],
                              preferred_element_type=jnp.float32)  # (Lq, D)
    # One lane-dense store of all heads' probabilities (XLU concat is cheap).
    attn_ref[0] = jnp.concatenate(probs, axis=-1)                  # (Lq, H*Lk)
    return _layernorm(residual + proj, gamma, beta)


# ---------------------------------------------------------------------------
# Single fused kernel: one batch element per grid step
# ---------------------------------------------------------------------------
def decoder_layer_kernel(dec_ref, enc_ref,
                         sa_wq_ref, sa_wo_ref, sa_bo_ref, sa_g_ref, sa_b_ref,
                         ea_wq_ref, ea_wo_ref, ea_bo_ref, ea_g_ref, ea_b_ref,
                         ff_w1_ref, ff_w2_ref, ff_g_ref, ff_b_ref,
                         out_ref, sattn_ref, eattn_ref):
    scale = 1.0 / math.sqrt(D_K)
    x = dec_ref[0]          # (Lq, D)
    enc = enc_ref[0]        # (Lk, D)

    # ---- decoder self-attention: input_Q == input_K == input_V and the same
    #      W_Q is used for all three, so one projection gives Q == K == V.
    qkv = jnp.dot(x, sa_wq_ref[...], preferred_element_type=jnp.float32)
    x1 = _attention_block(x, qkv * scale, qkv,
                          sa_wo_ref[...], sa_bo_ref[...],
                          sa_g_ref[...], sa_b_ref[...], sattn_ref)

    # ---- decoder-encoder attention: K and V both come from W_Q(enc_outputs).
    q2 = jnp.dot(x1, ea_wq_ref[...], preferred_element_type=jnp.float32)
    kv2 = jnp.dot(enc, ea_wq_ref[...], preferred_element_type=jnp.float32)
    x2 = _attention_block(x1, q2 * scale, kv2,
                          ea_wo_ref[...], ea_bo_ref[...],
                          ea_g_ref[...], ea_b_ref[...], eattn_ref)

    # ---- position-wise feed-forward
    h = jnp.maximum(
        jnp.dot(x2, ff_w1_ref[...], preferred_element_type=jnp.float32), 0.0)
    o = jnp.dot(h, ff_w2_ref[...], preferred_element_type=jnp.float32)
    out_ref[0] = _layernorm(x2 + o, ff_g_ref[...], ff_b_ref[...])


# ---------------------------------------------------------------------------
# pallas_call wrapper
# ---------------------------------------------------------------------------
def decoder_layer(params, dec_inputs, enc_outputs,
                  dec_self_attn_mask, dec_enc_attn_mask):
    # Masks accepted for API parity; no effect on output (reference semantics).
    del dec_self_attn_mask, dec_enc_attn_mask
    p = params
    B, Lq, D = dec_inputs.shape
    Lk = enc_outputs.shape[1]
    HD = N_HEADS * D_K
    DF = p["ff_w1"].shape[1]

    def wspec(shape):
        # Replicated weight/bias block (full array, same block every step).
        return pl.BlockSpec(shape, lambda b: (0,) * len(shape))

    out_shape = (
        jax.ShapeDtypeStruct((B, Lq, D), jnp.float32),
        jax.ShapeDtypeStruct((B, Lq, N_HEADS * Lq), jnp.float32),  # lane-dense attn
        jax.ShapeDtypeStruct((B, Lq, N_HEADS * Lk), jnp.float32),  # lane-dense attn
    )
    out, sattn, eattn = pl.pallas_call(
        decoder_layer_kernel,
        out_shape=out_shape,
        grid=(B,),
        in_specs=[
            pl.BlockSpec((1, Lq, D), lambda b: (b, 0, 0)),
            pl.BlockSpec((1, Lk, D), lambda b: (b, 0, 0)),
            wspec((D, HD)), wspec((HD, D)), wspec((1, D)), wspec((1, D)), wspec((1, D)),
            wspec((D, HD)), wspec((HD, D)), wspec((1, D)), wspec((1, D)), wspec((1, D)),
            wspec((D, DF)), wspec((DF, D)), wspec((1, D)), wspec((1, D)),
        ],
        out_specs=(
            pl.BlockSpec((1, Lq, D), lambda b: (b, 0, 0)),
            pl.BlockSpec((1, Lq, N_HEADS * Lq), lambda b: (b, 0, 0)),
            pl.BlockSpec((1, Lq, N_HEADS * Lk), lambda b: (b, 0, 0)),
        ),
        compiler_params=pltpu.CompilerParams(
            dimension_semantics=("parallel",)),
    )(dec_inputs, enc_outputs,
      p["sa_wq"], p["sa_wo"], p["sa_bo"], p["sa_g"], p["sa_b"],
      p["ea_wq"], p["ea_wo"], p["ea_bo"], p["ea_g"], p["ea_b"],
      p["ff_w1"], p["ff_w2"], p["ff_g"], p["ff_b"])

    # Layout plumbing outside the kernel: (B, Lq, H*Lk) -> (B, H, Lq, Lk).
    dec_self_attn = sattn.reshape(B, Lq, N_HEADS, Lq).transpose(0, 2, 1, 3)
    dec_enc_attn = eattn.reshape(B, Lq, N_HEADS, Lk).transpose(0, 2, 1, 3)
    return out, dec_self_attn, dec_enc_attn


# ---------------------------------------------------------------------------
# Pure-JAX reference (for a correctness check)
# ---------------------------------------------------------------------------
def _mha_ref(xq, xkv, wq, wo, bo, gamma, beta):
    B, Lq, _ = xq.shape
    Lk = xkv.shape[1]
    q = (xq @ wq).reshape(B, Lq, N_HEADS, D_K).transpose(0, 2, 1, 3)
    k = (xkv @ wq).reshape(B, Lk, N_HEADS, D_K).transpose(0, 2, 1, 3)
    v = k
    s = jnp.einsum("bhqd,bhkd->bhqk", q, k) / math.sqrt(D_K)
    p = jax.nn.softmax(s, axis=-1)
    o = jnp.einsum("bhqk,bhkd->bhqd", p, v)
    o = o.transpose(0, 2, 1, 3).reshape(B, Lq, N_HEADS * D_K)
    o = o @ wo + bo
    return _layernorm(xq + o, gamma, beta), p


def _decoder_ref(params, dec_inputs, enc_outputs):
    p = params
    x1, a1 = _mha_ref(dec_inputs, dec_inputs, p["sa_wq"], p["sa_wo"],
                      p["sa_bo"], p["sa_g"], p["sa_b"])
    x2, a2 = _mha_ref(x1, enc_outputs, p["ea_wq"], p["ea_wo"],
                      p["ea_bo"], p["ea_g"], p["ea_b"])
    h = jnp.maximum(x2 @ p["ff_w1"], 0.0)
    o = h @ p["ff_w2"]
    x3 = _layernorm(x2 + o, p["ff_g"], p["ff_b"])
    return x3, a1, a2


# ---------------------------------------------------------------------------
if __name__ == "__main__":
    key = jax.random.PRNGKey(0)
    B, TGT_LEN, SRC_LEN = 2, 8, 8
    ks = jax.random.split(key, 12)

    def w(k, shape, scale=0.1):
        return (scale * jax.random.normal(k, shape)).astype(jnp.float32)

    params = {
        # decoder self-attention
        "sa_wq": w(ks[0], (D_MODEL, N_HEADS * D_K)),
        "sa_wo": w(ks[1], (N_HEADS * D_K, D_MODEL)),
        "sa_bo": w(ks[2], (1, D_MODEL)),
        "sa_g": jnp.ones((1, D_MODEL), jnp.float32),
        "sa_b": jnp.zeros((1, D_MODEL), jnp.float32),
        # decoder-encoder attention
        "ea_wq": w(ks[3], (D_MODEL, N_HEADS * D_K)),
        "ea_wo": w(ks[4], (N_HEADS * D_K, D_MODEL)),
        "ea_bo": w(ks[5], (1, D_MODEL)),
        "ea_g": jnp.ones((1, D_MODEL), jnp.float32),
        "ea_b": jnp.zeros((1, D_MODEL), jnp.float32),
        # position-wise feed-forward
        "ff_w1": w(ks[6], (D_MODEL, D_FF)),
        "ff_w2": w(ks[7], (D_FF, D_MODEL)),
        "ff_g": jnp.ones((1, D_MODEL), jnp.float32),
        "ff_b": jnp.zeros((1, D_MODEL), jnp.float32),
    }

    dec_inputs = jax.random.normal(ks[8], (B, TGT_LEN, D_MODEL), jnp.float32)
    enc_outputs = jax.random.normal(ks[9], (B, SRC_LEN, D_MODEL), jnp.float32)
    dec_self_attn_mask = jnp.zeros((B, TGT_LEN, TGT_LEN), dtype=jnp.bool_)
    dec_enc_attn_mask = jnp.zeros((B, TGT_LEN, SRC_LEN), dtype=jnp.bool_)

    out, self_attn, enc_attn = decoder_layer(
        params, dec_inputs, enc_outputs, dec_self_attn_mask, dec_enc_attn_mask)
    jax.block_until_ready((out, self_attn, enc_attn))

    ref_out, ref_self_attn, ref_enc_attn = _decoder_ref(
        params, dec_inputs, enc_outputs)

    assert out.shape == (B, TGT_LEN, D_MODEL)
    assert self_attn.shape == (B, N_HEADS, TGT_LEN, TGT_LEN)
    assert enc_attn.shape == (B, N_HEADS, TGT_LEN, SRC_LEN)
    assert jnp.allclose(out, ref_out, rtol=1e-4, atol=1e-4)
    assert jnp.allclose(self_attn, ref_self_attn, rtol=1e-4, atol=1e-4)
    assert jnp.allclose(enc_attn, ref_enc_attn, rtol=1e-4, atol=1e-4)

    print("KERNEL_OK")
</pallas_src>

<mosaic_0001>
module attributes {stable_mosaic.version = 11 : i64} {
  func.func @decoder_layer_kernel(%arg0: i32, %arg1: memref<1x8x32xf32, #tpu.memory_space<vmem>>, %arg2: memref<1x8x32xf32, #tpu.memory_space<vmem>>, %arg3: memref<32x32xf32, #tpu.memory_space<vmem>>, %arg4: memref<32x32xf32, #tpu.memory_space<vmem>>, %arg5: memref<1x32xf32, #tpu.memory_space<vmem>>, %arg6: memref<1x32xf32, #tpu.memory_space<vmem>>, %arg7: memref<1x32xf32, #tpu.memory_space<vmem>>, %arg8: memref<32x32xf32, #tpu.memory_space<vmem>>, %arg9: memref<32x32xf32, #tpu.memory_space<vmem>>, %arg10: memref<1x32xf32, #tpu.memory_space<vmem>>, %arg11: memref<1x32xf32, #tpu.memory_space<vmem>>, %arg12: memref<1x32xf32, #tpu.memory_space<vmem>>, %arg13: memref<32x64xf32, #tpu.memory_space<vmem>>, %arg14: memref<64x32xf32, #tpu.memory_space<vmem>>, %arg15: memref<1x32xf32, #tpu.memory_space<vmem>>, %arg16: memref<1x32xf32, #tpu.memory_space<vmem>>, %arg17: memref<1x8x32xf32, #tpu.memory_space<vmem>>, %arg18: memref<1x8x32xf32, #tpu.memory_space<vmem>>, %arg19: memref<1x8x32xf32, #tpu.memory_space<vmem>>) attributes {dimension_semantics = [#tpu.dimension_semantics<parallel>], iteration_bounds = array<i64: 2>, scalar_prefetch = 0 : i64, scratch_operands = 0 : i64, tpu.core_type = #tpu.core_type<tc>, window_params = [{transform_indices = @transform_0, window_bounds = array<i64: 1, 8, 32>}, {transform_indices = @transform_1, window_bounds = array<i64: 1, 8, 32>}, {pipeline_mode = #tpu.pipeline_mode<synchronous>, transform_indices = @transform_2, window_bounds = array<i64: 32, 32>}, {pipeline_mode = #tpu.pipeline_mode<synchronous>, transform_indices = @transform_3, window_bounds = array<i64: 32, 32>}, {pipeline_mode = #tpu.pipeline_mode<synchronous>, transform_indices = @transform_4, window_bounds = array<i64: 1, 32>}, {pipeline_mode = #tpu.pipeline_mode<synchronous>, transform_indices = @transform_5, window_bounds = array<i64: 1, 32>}, {pipeline_mode = #tpu.pipeline_mode<synchronous>, transform_indices = @transform_6, window_bounds = array<i64: 1, 32>}, {pipeline_mode = #tpu.pipeline_mode<synchronous>, transform_indices = @transform_7, window_bounds = array<i64: 32, 32>}, {pipeline_mode = #tpu.pipeline_mode<synchronous>, transform_indices = @transform_8, window_bounds = array<i64: 32, 32>}, {pipeline_mode = #tpu.pipeline_mode<synchronous>, transform_indices = @transform_9, window_bounds = array<i64: 1, 32>}, {pipeline_mode = #tpu.pipeline_mode<synchronous>, transform_indices = @transform_10, window_bounds = array<i64: 1, 32>}, {pipeline_mode = #tpu.pipeline_mode<synchronous>, transform_indices = @transform_11, window_bounds = array<i64: 1, 32>}, {pipeline_mode = #tpu.pipeline_mode<synchronous>, transform_indices = @transform_12, window_bounds = array<i64: 32, 64>}, {pipeline_mode = #tpu.pipeline_mode<synchronous>, transform_indices = @transform_13, window_bounds = array<i64: 64, 32>}, {pipeline_mode = #tpu.pipeline_mode<synchronous>, transform_indices = @transform_14, window_bounds = array<i64: 1, 32>}, {pipeline_mode = #tpu.pipeline_mode<synchronous>, transform_indices = @transform_15, window_bounds = array<i64: 1, 32>}, {transform_indices = @transform_16, window_bounds = array<i64: 1, 8, 32>}, {transform_indices = @transform_17, window_bounds = array<i64: 1, 8, 32>}, {transform_indices = @transform_18, window_bounds = array<i64: 1, 8, 32>}]} {
    %c0 = arith.constant 0 : index
    %c0_0 = arith.constant 0 : index
    %c0_1 = arith.constant 0 : index
    %0 = vector.load %arg1[%c0, %c0_0, %c0_1] : memref<1x8x32xf32, #tpu.memory_space<vmem>>, vector<1x8x32xf32>
    %1 = vector.shape_cast %0 : vector<1x8x32xf32> to vector<8x32xf32>
    %c0_2 = arith.constant 0 : index
    %c0_3 = arith.constant 0 : index
    %c0_4 = arith.constant 0 : index
    %2 = vector.load %arg2[%c0_2, %c0_3, %c0_4] : memref<1x8x32xf32, #tpu.memory_space<vmem>>, vector<1x8x32xf32>
    %3 = vector.shape_cast %2 : vector<1x8x32xf32> to vector<8x32xf32>
    %c0_5 = arith.constant 0 : index
    %c0_6 = arith.constant 0 : index
    %4 = vector.load %arg3[%c0_5, %c0_6] : memref<32x32xf32, #tpu.memory_space<vmem>>, vector<32x32xf32>
    %cst = arith.constant dense<0.000000e+00> : vector<8x32xf32>
    %5 = tpu.matmul %1, %4, %cst {dimension_numbers = #tpu.dot_dimension_numbers<[1], [0], [0], [1], [0, 0, 1, 1], [], []>} : vector<8x32xf32>, vector<32x32xf32>, vector<8x32xf32> -> vector<8x32xf32>
    %cst_7 = arith.constant 0.353553385 : f32
    %6 = vector.broadcast %cst_7 : f32 to vector<8x32xf32>
    %7 = arith.mulf %5, %6 : vector<8x32xf32>
    %c0_8 = arith.constant 0 : index
    %c0_9 = arith.constant 0 : index
    %8 = vector.load %arg4[%c0_8, %c0_9] : memref<32x32xf32, #tpu.memory_space<vmem>>, vector<32x32xf32>
    %c0_10 = arith.constant 0 : index
    %c0_11 = arith.constant 0 : index
    %9 = vector.load %arg5[%c0_10, %c0_11] : memref<1x32xf32, #tpu.memory_space<vmem>>, vector<1x32xf32>
    %c0_12 = arith.constant 0 : index
    %c0_13 = arith.constant 0 : index
    %10 = vector.load %arg6[%c0_12, %c0_13] : memref<1x32xf32, #tpu.memory_space<vmem>>, vector<1x32xf32>
    %c0_14 = arith.constant 0 : index
    %c0_15 = arith.constant 0 : index
    %11 = vector.load %arg7[%c0_14, %c0_15] : memref<1x32xf32, #tpu.memory_space<vmem>>, vector<1x32xf32>
    %12 = vector.extract_strided_slice %7 {offsets = [0, 0], sizes = [8, 8], strides = [1, 1]} : vector<8x32xf32> to vector<8x8xf32>
    %13 = vector.extract_strided_slice %5 {offsets = [0, 0], sizes = [8, 8], strides = [1, 1]} : vector<8x32xf32> to vector<8x8xf32>
    %14 = tpu.transpose %13, [1, 0] : vector<8x8xf32> -> vector<8x8xf32>
    %cst_16 = arith.constant dense<0.000000e+00> : vector<8x8xf32>
    %15 = tpu.matmul %12, %14, %cst_16 {dimension_numbers = #tpu.dot_dimension_numbers<[1], [0], [0], [1], [0, 0, 1, 1], [], []>} : vector<8x8xf32>, vector<8x8xf32>, vector<8x8xf32> -> vector<8x8xf32>
    %cst_17 = arith.constant dense<0xFF800000> : vector<8xf32>
    %16 = vector.multi_reduction <maximumf>, %15, %cst_17 [1] : vector<8x8xf32> to vector<8xf32>
    %17 = vector.shape_cast %16 : vector<8xf32> to vector<8x1xf32>
    %18 = vector.broadcast %17 : vector<8x1xf32> to vector<8x8xf32>
    %19 = arith.subf %15, %18 : vector<8x8xf32>
    %20 = math.exp %19 : vector<8x8xf32>
    %cst_18 = arith.constant dense<0.000000e+00> : vector<8xf32>
    %21 = vector.multi_reduction <add>, %20, %cst_18 [1] : vector<8x8xf32> to vector<8xf32>
    %22 = vector.shape_cast %21 : vector<8xf32> to vector<8x1xf32>
    %23 = vector.broadcast %22 : vector<8x1xf32> to vector<8x8xf32>
    %24 = arith.divf %20, %23 : vector<8x8xf32>
    %cst_19 = arith.constant dense<0.000000e+00> : vector<8x8xf32>
    %25 = tpu.matmul %24, %13, %cst_19 {dimension_numbers = #tpu.dot_dimension_numbers<[1], [0], [0], [1], [0, 0, 1, 1], [], []>} : vector<8x8xf32>, vector<8x8xf32>, vector<8x8xf32> -> vector<8x8xf32>
    %26 = vector.extract_strided_slice %8 {offsets = [0, 0], sizes = [8, 32], strides = [1, 1]} : vector<32x32xf32> to vector<8x32xf32>
    %cst_20 = arith.constant dense<0.000000e+00> : vector<8x32xf32>
    %27 = tpu.matmul %25, %26, %cst_20 {dimension_numbers = #tpu.dot_dimension_numbers<[1], [0], [0], [1], [0, 0, 1, 1], [], []>} : vector<8x8xf32>, vector<8x32xf32>, vector<8x32xf32> -> vector<8x32xf32>
    %28 = vector.broadcast %9 : vector<1x32xf32> to vector<8x32xf32>
    %29 = arith.addf %28, %27 : vector<8x32xf32>
    %30 = vector.extract_strided_slice %7 {offsets = [0, 8], sizes = [8, 8], strides = [1, 1]} : vector<8x32xf32> to vector<8x8xf32>
    %31 = vector.extract_strided_slice %5 {offsets = [0, 8], sizes = [8, 8], strides = [1, 1]} : vector<8x32xf32> to vector<8x8xf32>
    %32 = tpu.transpose %31, [1, 0] : vector<8x8xf32> -> vector<8x8xf32>
    %cst_21 = arith.constant dense<0.000000e+00> : vector<8x8xf32>
    %33 = tpu.matmul %30, %32, %cst_21 {dimension_numbers = #tpu.dot_dimension_numbers<[1], [0], [0], [1], [0, 0, 1, 1], [], []>} : vector<8x8xf32>, vector<8x8xf32>, vector<8x8xf32> -> vector<8x8xf32>
    %cst_22 = arith.constant dense<0xFF800000> : vector<8xf32>
    %34 = vector.multi_reduction <maximumf>, %33, %cst_22 [1] : vector<8x8xf32> to vector<8xf32>
    %35 = vector.shape_cast %34 : vector<8xf32> to vector<8x1xf32>
    %36 = vector.broadcast %35 : vector<8x1xf32> to vector<8x8xf32>
    %37 = arith.subf %33, %36 : vector<8x8xf32>
    %38 = math.exp %37 : vector<8x8xf32>
    %cst_23 = arith.constant dense<0.000000e+00> : vector<8xf32>
    %39 = vector.multi_reduction <add>, %38, %cst_23 [1] : vector<8x8xf32> to vector<8xf32>
    %40 = vector.shape_cast %39 : vector<8xf32> to vector<8x1xf32>
    %41 = vector.broadcast %40 : vector<8x1xf32> to vector<8x8xf32>
    %42 = arith.divf %38, %41 : vector<8x8xf32>
    %cst_24 = arith.constant dense<0.000000e+00> : vector<8x8xf32>
    %43 = tpu.matmul %42, %31, %cst_24 {dimension_numbers = #tpu.dot_dimension_numbers<[1], [0], [0], [1], [0, 0, 1, 1], [], []>} : vector<8x8xf32>, vector<8x8xf32>, vector<8x8xf32> -> vector<8x8xf32>
    %44 = vector.extract_strided_slice %8 {offsets = [8, 0], sizes = [8, 32], strides = [1, 1]} : vector<32x32xf32> to vector<8x32xf32>
    %cst_25 = arith.constant dense<0.000000e+00> : vector<8x32xf32>
    %45 = tpu.matmul %43, %44, %cst_25 {dimension_numbers = #tpu.dot_dimension_numbers<[1], [0], [0], [1], [0, 0, 1, 1], [], []>} : vector<8x8xf32>, vector<8x32xf32>, vector<8x32xf32> -> vector<8x32xf32>
    %46 = arith.addf %29, %45 : vector<8x32xf32>
    %47 = vector.extract_strided_slice %7 {offsets = [0, 16], sizes = [8, 8], strides = [1, 1]} : vector<8x32xf32> to vector<8x8xf32>
    %48 = vector.extract_strided_slice %5 {offsets = [0, 16], sizes = [8, 8], strides = [1, 1]} : vector<8x32xf32> to vector<8x8xf32>
    %49 = tpu.transpose %48, [1, 0] : vector<8x8xf32> -> vector<8x8xf32>
    %cst_26 = arith.constant dense<0.000000e+00> : vector<8x8xf32>
    %50 = tpu.matmul %47, %49, %cst_26 {dimension_numbers = #tpu.dot_dimension_numbers<[1], [0], [0], [1], [0, 0, 1, 1], [], []>} : vector<8x8xf32>, vector<8x8xf32>, vector<8x8xf32> -> vector<8x8xf32>
    %cst_27 = arith.constant dense<0xFF800000> : vector<8xf32>
    %51 = vector.multi_reduction <maximumf>, %50, %cst_27 [1] : vector<8x8xf32> to vector<8xf32>
    %52 = vector.shape_cast %51 : vector<8xf32> to vector<8x1xf32>
    %53 = vector.broadcast %52 : vector<8x1xf32> to vector<8x8xf32>
    %54 = arith.subf %50, %53 : vector<8x8xf32>
    %55 = math.exp %54 : vector<8x8xf32>
    %cst_28 = arith.constant dense<0.000000e+00> : vector<8xf32>
    %56 = vector.multi_reduction <add>, %55, %cst_28 [1] : vector<8x8xf32> to vector<8xf32>
    %57 = vector.shape_cast %56 : vector<8xf32> to vector<8x1xf32>
    %58 = vector.broadcast %57 : vector<8x1xf32> to vector<8x8xf32>
    %59 = arith.divf %55, %58 : vector<8x8xf32>
    %cst_29 = arith.constant dense<0.000000e+00> : vector<8x8xf32>
    %60 = tpu.matmul %59, %48, %cst_29 {dimension_numbers = #tpu.dot_dimension_numbers<[1], [0], [0], [1], [0, 0, 1, 1], [], []>} : vector<8x8xf32>, vector<8x8xf32>, vector<8x8xf32> -> vector<8x8xf32>
    %61 = vector.extract_strided_slice %8 {offsets = [16, 0], sizes = [8, 32], strides = [1, 1]} : vector<32x32xf32> to vector<8x32xf32>
    %cst_30 = arith.constant dense<0.000000e+00> : vector<8x32xf32>
    %62 = tpu.matmul %60, %61, %cst_30 {dimension_numbers = #tpu.dot_dimension_numbers<[1], [0], [0], [1], [0, 0, 1, 1], [], []>} : vector<8x8xf32>, vector<8x32xf32>, vector<8x32xf32> -> vector<8x32xf32>
    %63 = arith.addf %46, %62 : vector<8x32xf32>
    %64 = vector.extract_strided_slice %7 {offsets = [0, 24], sizes = [8, 8], strides = [1, 1]} : vector<8x32xf32> to vector<8x8xf32>
    %65 = vector.extract_strided_slice %5 {offsets = [0, 24], sizes = [8, 8], strides = [1, 1]} : vector<8x32xf32> to vector<8x8xf32>
    %66 = tpu.transpose %65, [1, 0] : vector<8x8xf32> -> vector<8x8xf32>
    %cst_31 = arith.constant dense<0.000000e+00> : vector<8x8xf32>
    %67 = tpu.matmul %64, %66, %cst_31 {dimension_numbers = #tpu.dot_dimension_numbers<[1], [0], [0], [1], [0, 0, 1, 1], [], []>} : vector<8x8xf32>, vector<8x8xf32>, vector<8x8xf32> -> vector<8x8xf32>
    %cst_32 = arith.constant dense<0xFF800000> : vector<8xf32>
    %68 = vector.multi_reduction <maximumf>, %67, %cst_32 [1] : vector<8x8xf32> to vector<8xf32>
    %69 = vector.shape_cast %68 : vector<8xf32> to vector<8x1xf32>
    %70 = vector.broadcast %69 : vector<8x1xf32> to vector<8x8xf32>
    %71 = arith.subf %67, %70 : vector<8x8xf32>
    %72 = math.exp %71 : vector<8x8xf32>
    %cst_33 = arith.constant dense<0.000000e+00> : vector<8xf32>
    %73 = vector.multi_reduction <add>, %72, %cst_33 [1] : vector<8x8xf32> to vector<8xf32>
    %74 = vector.shape_cast %73 : vector<8xf32> to vector<8x1xf32>
    %75 = vector.broadcast %74 : vector<8x1xf32> to vector<8x8xf32>
    %76 = arith.divf %72, %75 : vector<8x8xf32>
    %cst_34 = arith.constant dense<0.000000e+00> : vector<8x8xf32>
    %77 = tpu.matmul %76, %65, %cst_34 {dimension_numbers = #tpu.dot_dimension_numbers<[1], [0], [0], [1], [0, 0, 1, 1], [], []>} : vector<8x8xf32>, vector<8x8xf32>, vector<8x8xf32> -> vector<8x8xf32>
    %78 = vector.extract_strided_slice %8 {offsets = [24, 0], sizes = [8, 32], strides = [1, 1]} : vector<32x32xf32> to vector<8x32xf32>
    %cst_35 = arith.constant dense<0.000000e+00> : vector<8x32xf32>
    %79 = tpu.matmul %77, %78, %cst_35 {dimension_numbers = #tpu.dot_dimension_numbers<[1], [0], [0], [1], [0, 0, 1, 1], [], []>} : vector<8x8xf32>, vector<8x32xf32>, vector<8x32xf32> -> vector<8x32xf32>
    %80 = arith.addf %63, %79 : vector<8x32xf32>
    %81 = tpu.concatenate %24, %42, %59, %76 in 1 : vector<8x8xf32>, vector<8x8xf32>, vector<8x8xf32>, vector<8x8xf32> -> vector<8x32xf32>
    %c0_36 = arith.constant 0 : index
    %c0_37 = arith.constant 0 : index
    %c0_38 = arith.constant 0 : index
    %82 = vector.load %arg18[%c0_36, %c0_37, %c0_38] : memref<1x8x32xf32, #tpu.memory_space<vmem>>, vector<1x8x32xf32>
    %83 = vector.shape_cast %82 : vector<1x8x32xf32> to vector<8x32xf32>
    %84 = vector.shape_cast %81 : vector<8x32xf32> to vector<1x8x32xf32>
    tpu.vector_store %arg18[%c0_36, %c0_37, %c0_38], %84 {strides = array<i32>} : memref<1x8x32xf32, #tpu.memory_space<vmem>>, vector<1x8x32xf32>,
    %85 = arith.addf %1, %80 : vector<8x32xf32>
    %cst_39 = arith.constant dense<0.000000e+00> : vector<8xf32>
    %86 = vector.multi_reduction <add>, %85, %cst_39 [1] : vector<8x32xf32> to vector<8xf32>
    %87 = vector.shape_cast %86 : vector<8xf32> to vector<8x1xf32>
    %cst_40 = arith.constant 3.200000e+01 : f32
    %88 = vector.broadcast %cst_40 : f32 to vector<8x1xf32>
    %89 = arith.divf %87, %88 : vector<8x1xf32>
    %90 = vector.broadcast %89 : vector<8x1xf32> to vector<8x32xf32>
    %91 = arith.subf %85, %90 : vector<8x32xf32>
    %92 = arith.mulf %91, %91 : vector<8x32xf32>
    %cst_41 = arith.constant dense<0.000000e+00> : vector<8xf32>
    %93 = vector.multi_reduction <add>, %92, %cst_41 [1] : vector<8x32xf32> to vector<8xf32>
    %94 = vector.shape_cast %93 : vector<8xf32> to vector<8x1xf32>
    %cst_42 = arith.constant 3.200000e+01 : f32
    %95 = vector.broadcast %cst_42 : f32 to vector<8x1xf32>
    %96 = arith.divf %94, %95 : vector<8x1xf32>
    %97 = vector.broadcast %89 : vector<8x1xf32> to vector<8x32xf32>
    %98 = arith.subf %85, %97 : vector<8x32xf32>
    %cst_43 = arith.constant 9.99999974E-6 : f32
    %99 = vector.broadcast %cst_43 : f32 to vector<8x1xf32>
    %100 = arith.addf %96, %99 : vector<8x1xf32>
    %101 = math.rsqrt %100 : vector<8x1xf32>
    %102 = vector.broadcast %101 : vector<8x1xf32> to vector<8x32xf32>
    %103 = arith.mulf %98, %102 : vector<8x32xf32>
    %104 = vector.broadcast %10 : vector<1x32xf32> to vector<8x32xf32>
    %105 = arith.mulf %103, %104 : vector<8x32xf32>
    %106 = vector.broadcast %11 : vector<1x32xf32> to vector<8x32xf32>
    %107 = arith.addf %105, %106 : vector<8x32xf32>
    %c0_44 = arith.constant 0 : index
    %c0_45 = arith.constant 0 : index
    %108 = vector.load %arg8[%c0_44, %c0_45] : memref<32x32xf32, #tpu.memory_space<vmem>>, vector<32x32xf32>
    %cst_46 = arith.constant dense<0.000000e+00> : vector<8x32xf32>
    %109 = tpu.matmul %107, %108, %cst_46 {dimension_numbers = #tpu.dot_dimension_numbers<[1], [0], [0], [1], [0, 0, 1, 1], [], []>} : vector<8x32xf32>, vector<32x32xf32>, vector<8x32xf32> -> vector<8x32xf32>
    %c0_47 = arith.constant 0 : index
    %c0_48 = arith.constant 0 : index
    %110 = vector.load %arg8[%c0_47, %c0_48] : memref<32x32xf32, #tpu.memory_space<vmem>>, vector<32x32xf32>
    %cst_49 = arith.constant dense<0.000000e+00> : vector<8x32xf32>
    %111 = tpu.matmul %3, %110, %cst_49 {dimension_numbers = #tpu.dot_dimension_numbers<[1], [0], [0], [1], [0, 0, 1, 1], [], []>} : vector<8x32xf32>, vector<32x32xf32>, vector<8x32xf32> -> vector<8x32xf32>
    %cst_50 = arith.constant 0.353553385 : f32
    %112 = vector.broadcast %cst_50 : f32 to vector<8x32xf32>
    %113 = arith.mulf %109, %112 : vector<8x32xf32>
    %c0_51 = arith.constant 0 : index
    %c0_52 = arith.constant 0 : index
    %114 = vector.load %arg9[%c0_51, %c0_52] : memref<32x32xf32, #tpu.memory_space<vmem>>, vector<32x32xf32>
    %c0_53 = arith.constant 0 : index
    %c0_54 = arith.constant 0 : index
    %115 = vector.load %arg10[%c0_53, %c0_54] : memref<1x32xf32, #tpu.memory_space<vmem>>, vector<1x32xf32>
    %c0_55 = arith.constant 0 : index
    %c0_56 = arith.constant 0 : index
    %116 = vector.load %arg11[%c0_55, %c0_56] : memref<1x32xf32, #tpu.memory_space<vmem>>, vector<1x32xf32>
    %c0_57 = arith.constant 0 : index
    %c0_58 = arith.constant 0 : index
    %117 = vector.load %arg12[%c0_57, %c0_58] : memref<1x32xf32, #tpu.memory_space<vmem>>, vector<1x32xf32>
    %118 = vector.extract_strided_slice %113 {offsets = [0, 0], sizes = [8, 8], strides = [1, 1]} : vector<8x32xf32> to vector<8x8xf32>
    %119 = vector.extract_strided_slice %111 {offsets = [0, 0], sizes = [8, 8], strides = [1, 1]} : vector<8x32xf32> to vector<8x8xf32>
    %120 = tpu.transpose %119, [1, 0] : vector<8x8xf32> -> vector<8x8xf32>
    %cst_59 = arith.constant dense<0.000000e+00> : vector<8x8xf32>
    %121 = tpu.matmul %118, %120, %cst_59 {dimension_numbers = #tpu.dot_dimension_numbers<[1], [0], [0], [1], [0, 0, 1, 1], [], []>} : vector<8x8xf32>, vector<8x8xf32>, vector<8x8xf32> -> vector<8x8xf32>
    %cst_60 = arith.constant dense<0xFF800000> : vector<8xf32>
    %122 = vector.multi_reduction <maximumf>, %121, %cst_60 [1] : vector<8x8xf32> to vector<8xf32>
    %123 = vector.shape_cast %122 : vector<8xf32> to vector<8x1xf32>
    %124 = vector.broadcast %123 : vector<8x1xf32> to vector<8x8xf32>
    %125 = arith.subf %121, %124 : vector<8x8xf32>
    %126 = math.exp %125 : vector<8x8xf32>
    %cst_61 = arith.constant dense<0.000000e+00> : vector<8xf32>
    %127 = vector.multi_reduction <add>, %126, %cst_61 [1] : vector<8x8xf32> to vector<8xf32>
    %128 = vector.shape_cast %127 : vector<8xf32> to vector<8x1xf32>
    %129 = vector.broadcast %128 : vector<8x1xf32> to vector<8x8xf32>
    %130 = arith.divf %126, %129 : vector<8x8xf32>
    %cst_62 = arith.constant dense<0.000000e+00> : vector<8x8xf32>
    %131 = tpu.matmul %130, %119, %cst_62 {dimension_numbers = #tpu.dot_dimension_numbers<[1], [0], [0], [1], [0, 0, 1, 1], [], []>} : vector<8x8xf32>, vector<8x8xf32>, vector<8x8xf32> -> vector<8x8xf32>
    %132 = vector.extract_strided_slice %114 {offsets = [0, 0], sizes = [8, 32], strides = [1, 1]} : vector<32x32xf32> to vector<8x32xf32>
    %cst_63 = arith.constant dense<0.000000e+00> : vector<8x32xf32>
    %133 = tpu.matmul %131, %132, %cst_63 {dimension_numbers = #tpu.dot_dimension_numbers<[1], [0], [0], [1], [0, 0, 1, 1], [], []>} : vector<8x8xf32>, vector<8x32xf32>, vector<8x32xf32> -> vector<8x32xf32>
    %134 = vector.broadcast %115 : vector<1x32xf32> to vector<8x32xf32>
    %135 = arith.addf %134, %133 : vector<8x32xf32>
    %136 = vector.extract_strided_slice %113 {offsets = [0, 8], sizes = [8, 8], strides = [1, 1]} : vector<8x32xf32> to vector<8x8xf32>
    %137 = vector.extract_strided_slice %111 {offsets = [0, 8], sizes = [8, 8], strides = [1, 1]} : vector<8x32xf32> to vector<8x8xf32>
    %138 = tpu.transpose %137, [1, 0] : vector<8x8xf32> -> vector<8x8xf32>
    %cst_64 = arith.constant dense<0.000000e+00> : vector<8x8xf32>
    %139 = tpu.matmul %136, %138, %cst_64 {dimension_numbers = #tpu.dot_dimension_numbers<[1], [0], [0], [1], [0, 0, 1, 1], [], []>} : vector<8x8xf32>, vector<8x8xf32>, vector<8x8xf32> -> vector<8x8xf32>
    %cst_65 = arith.constant dense<0xFF800000> : vector<8xf32>
    %140 = vector.multi_reduction <maximumf>, %139, %cst_65 [1] : vector<8x8xf32> to vector<8xf32>
    %141 = vector.shape_cast %140 : vector<8xf32> to vector<8x1xf32>
    %142 = vector.broadcast %141 : vector<8x1xf32> to vector<8x8xf32>
    %143 = arith.subf %139, %142 : vector<8x8xf32>
    %144 = math.exp %143 : vector<8x8xf32>
    %cst_66 = arith.constant dense<0.000000e+00> : vector<8xf32>
    %145 = vector.multi_reduction <add>, %144, %cst_66 [1] : vector<8x8xf32> to vector<8xf32>
    %146 = vector.shape_cast %145 : vector<8xf32> to vector<8x1xf32>
    %147 = vector.broadcast %146 : vector<8x1xf32> to vector<8x8xf32>
    %148 = arith.divf %144, %147 : vector<8x8xf32>
    %cst_67 = arith.constant dense<0.000000e+00> : vector<8x8xf32>
    %149 = tpu.matmul %148, %137, %cst_67 {dimension_numbers = #tpu.dot_dimension_numbers<[1], [0], [0], [1], [0, 0, 1, 1], [], []>} : vector<8x8xf32>, vector<8x8xf32>, vector<8x8xf32> -> vector<8x8xf32>
    %150 = vector.extract_strided_slice %114 {offsets = [8, 0], sizes = [8, 32], strides = [1, 1]} : vector<32x32xf32> to vector<8x32xf32>
    %cst_68 = arith.constant dense<0.000000e+00> : vector<8x32xf32>
    %151 = tpu.matmul %149, %150, %cst_68 {dimension_numbers = #tpu.dot_dimension_numbers<[1], [0], [0], [1], [0, 0, 1, 1], [], []>} : vector<8x8xf32>, vector<8x32xf32>, vector<8x32xf32> -> vector<8x32xf32>
    %152 = arith.addf %135, %151 : vector<8x32xf32>
    %153 = vector.extract_strided_slice %113 {offsets = [0, 16], sizes = [8, 8], strides = [1, 1]} : vector<8x32xf32> to vector<8x8xf32>
    %154 = vector.extract_strided_slice %111 {offsets = [0, 16], sizes = [8, 8], strides = [1, 1]} : vector<8x32xf32> to vector<8x8xf32>
    %155 = tpu.transpose %154, [1, 0] : vector<8x8xf32> -> vector<8x8xf32>
    %cst_69 = arith.constant dense<0.000000e+00> : vector<8x8xf32>
    %156 = tpu.matmul %153, %155, %cst_69 {dimension_numbers = #tpu.dot_dimension_numbers<[1], [0], [0], [1], [0, 0, 1, 1], [], []>} : vector<8x8xf32>, vector<8x8xf32>, vector<8x8xf32> -> vector<8x8xf32>
    %cst_70 = arith.constant dense<0xFF800000> : vector<8xf32>
    %157 = vector.multi_reduction <maximumf>, %156, %cst_70 [1] : vector<8x8xf32> to vector<8xf32>
    %158 = vector.shape_cast %157 : vector<8xf32> to vector<8x1xf32>
    %159 = vector.broadcast %158 : vector<8x1xf32> to vector<8x8xf32>
    %160 = arith.subf %156, %159 : vector<8x8xf32>
    %161 = math.exp %160 : vector<8x8xf32>
    %cst_71 = arith.constant dense<0.000000e+00> : vector<8xf32>
    %162 = vector.multi_reduction <add>, %161, %cst_71 [1] : vector<8x8xf32> to vector<8xf32>
    %163 = vector.shape_cast %162 : vector<8xf32> to vector<8x1xf32>
    %164 = vector.broadcast %163 : vector<8x1xf32> to vector<8x8xf32>
    %165 = arith.divf %161, %164 : vector<8x8xf32>
    %cst_72 = arith.constant dense<0.000000e+00> : vector<8x8xf32>
    %166 = tpu.matmul %165, %154, %cst_72 {dimension_numbers = #tpu.dot_dimension_numbers<[1], [0], [0], [1], [0, 0, 1, 1], [], []>} : vector<8x8xf32>, vector<8x8xf32>, vector<8x8xf32> -> vector<8x8xf32>
    %167 = vector.extract_strided_slice %114 {offsets = [16, 0], sizes = [8, 32], strides = [1, 1]} : vector<32x32xf32> to vector<8x32xf32>
    %cst_73 = arith.constant dense<0.000000e+00> : vector<8x32xf32>
    %168 = tpu.matmul %166, %167, %cst_73 {dimension_numbers = #tpu.dot_dimension_numbers<[1], [0], [0], [1], [0, 0, 1, 1], [], []>} : vector<8x8xf32>, vector<8x32xf32>, vector<8x32xf32> -> vector<8x32xf32>
    %169 = arith.addf %152, %168 : vector<8x32xf32>
    %170 = vector.extract_strided_slice %113 {offsets = [0, 24], sizes = [8, 8], strides = [1, 1]} : vector<8x32xf32> to vector<8x8xf32>
    %171 = vector.extract_strided_slice %111 {offsets = [0, 24], sizes = [8, 8], strides = [1, 1]} : vector<8x32xf32> to vector<8x8xf32>
    %172 = tpu.transpose %171, [1, 0] : vector<8x8xf32> -> vector<8x8xf32>
    %cst_74 = arith.constant dense<0.000000e+00> : vector<8x8xf32>
    %173 = tpu.matmul %170, %172, %cst_74 {dimension_numbers = #tpu.dot_dimension_numbers<[1], [0], [0], [1], [0, 0, 1, 1], [], []>} : vector<8x8xf32>, vector<8x8xf32>, vector<8x8xf32> -> vector<8x8xf32>
    %cst_75 = arith.constant dense<0xFF800000> : vector<8xf32>
    %174 = vector.multi_reduction <maximumf>, %173, %cst_75 [1] : vector<8x8xf32> to vector<8xf32>
    %175 = vector.shape_cast %174 : vector<8xf32> to vector<8x1xf32>
    %176 = vector.broadcast %175 : vector<8x1xf32> to vector<8x8xf32>
    %177 = arith.subf %173, %176 : vector<8x8xf32>
    %178 = math.exp %177 : vector<8x8xf32>
    %cst_76 = arith.constant dense<0.000000e+00> : vector<8xf32>
    %179 = vector.multi_reduction <add>, %178, %cst_76 [1] : vector<8x8xf32> to vector<8xf32>
    %180 = vector.shape_cast %179 : vector<8xf32> to vector<8x1xf32>
    %181 = vector.broadcast %180 : vector<8x1xf32> to vector<8x8xf32>
    %182 = arith.divf %178, %181 : vector<8x8xf32>
    %cst_77 = arith.constant dense<0.000000e+00> : vector<8x8xf32>
    %183 = tpu.matmul %182, %171, %cst_77 {dimension_numbers = #tpu.dot_dimension_numbers<[1], [0], [0], [1], [0, 0, 1, 1], [], []>} : vector<8x8xf32>, vector<8x8xf32>, vector<8x8xf32> -> vector<8x8xf32>
    %184 = vector.extract_strided_slice %114 {offsets = [24, 0], sizes = [8, 32], strides = [1, 1]} : vector<32x32xf32> to vector<8x32xf32>
    %cst_78 = arith.constant dense<0.000000e+00> : vector<8x32xf32>
    %185 = tpu.matmul %183, %184, %cst_78 {dimension_numbers = #tpu.dot_dimension_numbers<[1], [0], [0], [1], [0, 0, 1, 1], [], []>} : vector<8x8xf32>, vector<8x32xf32>, vector<8x32xf32> -> vector<8x32xf32>
    %186 = arith.addf %169, %185 : vector<8x32xf32>
    %187 = tpu.concatenate %130, %148, %165, %182 in 1 : vector<8x8xf32>, vector<8x8xf32>, vector<8x8xf32>, vector<8x8xf32> -> vector<8x32xf32>
    %c0_79 = arith.constant 0 : index
    %c0_80 = arith.constant 0 : index
    %c0_81 = arith.constant 0 : index
    %188 = vector.load %arg19[%c0_79, %c0_80, %c0_81] : memref<1x8x32xf32, #tpu.memory_space<vmem>>, vector<1x8x32xf32>
    %189 = vector.shape_cast %188 : vector<1x8x32xf32> to vector<8x32xf32>
    %190 = vector.shape_cast %187 : vector<8x32xf32> to vector<1x8x32xf32>
    tpu.vector_store %arg19[%c0_79, %c0_80, %c0_81], %190 {strides = array<i32>} : memref<1x8x32xf32, #tpu.memory_space<vmem>>, vector<1x8x32xf32>,
    %191 = arith.addf %107, %186 : vector<8x32xf32>
    %cst_82 = arith.constant dense<0.000000e+00> : vector<8xf32>
    %192 = vector.multi_reduction <add>, %191, %cst_82 [1] : vector<8x32xf32> to vector<8xf32>
    %193 = vector.shape_cast %192 : vector<8xf32> to vector<8x1xf32>
    %cst_83 = arith.constant 3.200000e+01 : f32
    %194 = vector.broadcast %cst_83 : f32 to vector<8x1xf32>
    %195 = arith.divf %193, %194 : vector<8x1xf32>
    %196 = vector.broadcast %195 : vector<8x1xf32> to vector<8x32xf32>
    %197 = arith.subf %191, %196 : vector<8x32xf32>
    %198 = arith.mulf %197, %197 : vector<8x32xf32>
    %cst_84 = arith.constant dense<0.000000e+00> : vector<8xf32>
    %199 = vector.multi_reduction <add>, %198, %cst_84 [1] : vector<8x32xf32> to vector<8xf32>
    %200 = vector.shape_cast %199 : vector<8xf32> to vector<8x1xf32>
    %cst_85 = arith.constant 3.200000e+01 : f32
    %201 = vector.broadcast %cst_85 : f32 to vector<8x1xf32>
    %202 = arith.divf %200, %201 : vector<8x1xf32>
    %203 = vector.broadcast %195 : vector<8x1xf32> to vector<8x32xf32>
    %204 = arith.subf %191, %203 : vector<8x32xf32>
    %cst_86 = arith.constant 9.99999974E-6 : f32
    %205 = vector.broadcast %cst_86 : f32 to vector<8x1xf32>
    %206 = arith.addf %202, %205 : vector<8x1xf32>
    %207 = math.rsqrt %206 : vector<8x1xf32>
    %208 = vector.broadcast %207 : vector<8x1xf32> to vector<8x32xf32>
    %209 = arith.mulf %204, %208 : vector<8x32xf32>
    %210 = vector.broadcast %116 : vector<1x32xf32> to vector<8x32xf32>
    %211 = arith.mulf %209, %210 : vector<8x32xf32>
    %212 = vector.broadcast %117 : vector<1x32xf32> to vector<8x32xf32>
    %213 = arith.addf %211, %212 : vector<8x32xf32>
    %c0_87 = arith.constant 0 : index
    %c0_88 = arith.constant 0 : index
    %214 = vector.load %arg13[%c0_87, %c0_88] : memref<32x64xf32, #tpu.memory_space<vmem>>, vector<32x64xf32>
    %cst_89 = arith.constant dense<0.000000e+00> : vector<8x64xf32>
    %215 = tpu.matmul %213, %214, %cst_89 {dimension_numbers = #tpu.dot_dimension_numbers<[1], [0], [0], [1], [0, 0, 1, 1], [], []>} : vector<8x32xf32>, vector<32x64xf32>, vector<8x64xf32> -> vector<8x64xf32>
    %cst_90 = arith.constant 0.000000e+00 : f32
    %216 = vector.broadcast %cst_90 : f32 to vector<8x64xf32>
    %217 = arith.maximumf %215, %216 : vector<8x64xf32>
    %c0_91 = arith.constant 0 : index
    %c0_92 = arith.constant 0 : index
    %218 = vector.load %arg14[%c0_91, %c0_92] : memref<64x32xf32, #tpu.memory_space<vmem>>, vector<64x32xf32>
    %cst_93 = arith.constant dense<0.000000e+00> : vector<8x32xf32>
    %219 = tpu.matmul %217, %218, %cst_93 {dimension_numbers = #tpu.dot_dimension_numbers<[1], [0], [0], [1], [0, 0, 1, 1], [], []>} : vector<8x64xf32>, vector<64x32xf32>, vector<8x32xf32> -> vector<8x32xf32>
    %220 = arith.addf %213, %219 : vector<8x32xf32>
    %c0_94 = arith.constant 0 : index
    %c0_95 = arith.constant 0 : index
    %221 = vector.load %arg15[%c0_94, %c0_95] : memref<1x32xf32, #tpu.memory_space<vmem>>, vector<1x32xf32>
    %c0_96 = arith.constant 0 : index
    %c0_97 = arith.constant 0 : index
    %222 = vector.load %arg16[%c0_96, %c0_97] : memref<1x32xf32, #tpu.memory_space<vmem>>, vector<1x32xf32>
    %cst_98 = arith.constant dense<0.000000e+00> : vector<8xf32>
    %223 = vector.multi_reduction <add>, %220, %cst_98 [1] : vector<8x32xf32> to vector<8xf32>
    %224 = vector.shape_cast %223 : vector<8xf32> to vector<8x1xf32>
    %cst_99 = arith.constant 3.200000e+01 : f32
    %225 = vector.broadcast %cst_99 : f32 to vector<8x1xf32>
    %226 = arith.divf %224, %225 : vector<8x1xf32>
    %227 = vector.broadcast %226 : vector<8x1xf32> to vector<8x32xf32>
    %228 = arith.subf %220, %227 : vector<8x32xf32>
    %229 = arith.mulf %228, %228 : vector<8x32xf32>
    %cst_100 = arith.constant dense<0.000000e+00> : vector<8xf32>
    %230 = vector.multi_reduction <add>, %229, %cst_100 [1] : vector<8x32xf32> to vector<8xf32>
    %231 = vector.shape_cast %230 : vector<8xf32> to vector<8x1xf32>
    %cst_101 = arith.constant 3.200000e+01 : f32
    %232 = vector.broadcast %cst_101 : f32 to vector<8x1xf32>
    %233 = arith.divf %231, %232 : vector<8x1xf32>
    %234 = vector.broadcast %226 : vector<8x1xf32> to vector<8x32xf32>
    %235 = arith.subf %220, %234 : vector<8x32xf32>
    %cst_102 = arith.constant 9.99999974E-6 : f32
    %236 = vector.broadcast %cst_102 : f32 to vector<8x1xf32>
    %237 = arith.addf %233, %236 : vector<8x1xf32>
    %238 = math.rsqrt %237 : vector<8x1xf32>
    %239 = vector.broadcast %238 : vector<8x1xf32> to vector<8x32xf32>
    %240 = arith.mulf %235, %239 : vector<8x32xf32>
    %241 = vector.broadcast %221 : vector<1x32xf32> to vector<8x32xf32>
    %242 = arith.mulf %240, %241 : vector<8x32xf32>
    %243 = vector.broadcast %222 : vector<1x32xf32> to vector<8x32xf32>
    %244 = arith.addf %242, %243 : vector<8x32xf32>
    %c0_103 = arith.constant 0 : index
    %c0_104 = arith.constant 0 : index
    %c0_105 = arith.constant 0 : index
    %245 = vector.load %arg17[%c0_103, %c0_104, %c0_105] : memref<1x8x32xf32, #tpu.memory_space<vmem>>, vector<1x8x32xf32>
    %246 = vector.shape_cast %245 : vector<1x8x32xf32> to vector<8x32xf32>
    %247 = vector.shape_cast %244 : vector<8x32xf32> to vector<1x8x32xf32>
    tpu.vector_store %arg17[%c0_103, %c0_104, %c0_105], %247 {strides = array<i32>} : memref<1x8x32xf32, #tpu.memory_space<vmem>>, vector<1x8x32xf32>,
    return
  }
  func.func @transform_0(%arg0: i32) -> (i32, i32, i32) {
    %c0_i32 = arith.constant 0 : i32
    %c0_i32_0 = arith.constant 0 : i32
    %c0_i32_1 = arith.constant 0 : i32
    return %arg0, %c0_i32, %c0_i32_0 : i32, i32, i32
  }
  func.func @transform_1(%arg0: i32) -> (i32, i32, i32) {
    %c0_i32 = arith.constant 0 : i32
    %c0_i32_0 = arith.constant 0 : i32
    %c0_i32_1 = arith.constant 0 : i32
    return %arg0, %c0_i32, %c0_i32_0 : i32, i32, i32
  }
  func.func @transform_2(%arg0: i32) -> (i32, i32) {
    %c0_i32 = arith.constant 0 : i32
    %c0_i32_0 = arith.constant 0 : i32
    %c0_i32_1 = arith.constant 0 : i32
    return %c0_i32, %c0_i32_0 : i32, i32
  }
  func.func @transform_3(%arg0: i32) -> (i32, i32) {
    %c0_i32 = arith.constant 0 : i32
    %c0_i32_0 = arith.constant 0 : i32
    %c0_i32_1 = arith.constant 0 : i32
    return %c0_i32, %c0_i32_0 : i32, i32
  }
  func.func @transform_4(%arg0: i32) -> (i32, i32) {
    %c0_i32 = arith.constant 0 : i32
    %c0_i32_0 = arith.constant 0 : i32
    %c0_i32_1 = arith.constant 0 : i32
    return %c0_i32, %c0_i32_0 : i32, i32
  }
  func.func @transform_5(%arg0: i32) -> (i32, i32) {
    %c0_i32 = arith.constant 0 : i32
    %c0_i32_0 = arith.constant 0 : i32
    %c0_i32_1 = arith.constant 0 : i32
    return %c0_i32, %c0_i32_0 : i32, i32
  }
  func.func @transform_6(%arg0: i32) -> (i32, i32) {
    %c0_i32 = arith.constant 0 : i32
    %c0_i32_0 = arith.constant 0 : i32
    %c0_i32_1 = arith.constant 0 : i32
    return %c0_i32, %c0_i32_0 : i32, i32
  }
  func.func @transform_7(%arg0: i32) -> (i32, i32) {
    %c0_i32 = arith.constant 0 : i32
    %c0_i32_0 = arith.constant 0 : i32
    %c0_i32_1 = arith.constant 0 : i32
    return %c0_i32, %c0_i32_0 : i32, i32
  }
  func.func @transform_8(%arg0: i32) -> (i32, i32) {
    %c0_i32 = arith.constant 0 : i32
    %c0_i32_0 = arith.constant 0 : i32
    %c0_i32_1 = arith.constant 0 : i32
    return %c0_i32, %c0_i32_0 : i32, i32
  }
  func.func @transform_9(%arg0: i32) -> (i32, i32) {
    %c0_i32 = arith.constant 0 : i32
    %c0_i32_0 = arith.constant 0 : i32
    %c0_i32_1 = arith.constant 0 : i32
    return %c0_i32, %c0_i32_0 : i32, i32
  }
  func.func @transform_10(%arg0: i32) -> (i32, i32) {
    %c0_i32 = arith.constant 0 : i32
    %c0_i32_0 = arith.constant 0 : i32
    %c0_i32_1 = arith.constant 0 : i32
    return %c0_i32, %c0_i32_0 : i32, i32
  }
  func.func @transform_11(%arg0: i32) -> (i32, i32) {
    %c0_i32 = arith.constant 0 : i32
    %c0_i32_0 = arith.constant 0 : i32
    %c0_i32_1 = arith.constant 0 : i32
    return %c0_i32, %c0_i32_0 : i32, i32
  }
  func.func @transform_12(%arg0: i32) -> (i32, i32) {
    %c0_i32 = arith.constant 0 : i32
    %c0_i32_0 = arith.constant 0 : i32
    %c0_i32_1 = arith.constant 0 : i32
    return %c0_i32, %c0_i32_0 : i32, i32
  }
  func.func @transform_13(%arg0: i32) -> (i32, i32) {
    %c0_i32 = arith.constant 0 : i32
    %c0_i32_0 = arith.constant 0 : i32
    %c0_i32_1 = arith.constant 0 : i32
    return %c0_i32, %c0_i32_0 : i32, i32
  }
  func.func @transform_14(%arg0: i32) -> (i32, i32) {
    %c0_i32 = arith.constant 0 : i32
    %c0_i32_0 = arith.constant 0 : i32
    %c0_i32_1 = arith.constant 0 : i32
    return %c0_i32, %c0_i32_0 : i32, i32
  }
  func.func @transform_15(%arg0: i32) -> (i32, i32) {
    %c0_i32 = arith.constant 0 : i32
    %c0_i32_0 = arith.constant 0 : i32
    %c0_i32_1 = arith.constant 0 : i32
    return %c0_i32, %c0_i32_0 : i32, i32
  }
  func.func @transform_16(%arg0: i32) -> (i32, i32, i32) {
    %c0_i32 = arith.constant 0 : i32
    %c0_i32_0 = arith.constant 0 : i32
    %c0_i32_1 = arith.constant 0 : i32
    return %arg0, %c0_i32, %c0_i32_0 : i32, i32, i32
  }
  func.func @transform_17(%arg0: i32) -> (i32, i32, i32) {
    %c0_i32 = arith.constant 0 : i32
    %c0_i32_0 = arith.constant 0 : i32
    %c0_i32_1 = arith.constant 0 : i32
    return %arg0, %c0_i32, %c0_i32_0 : i32, i32, i32
  }
  func.func @transform_18(%arg0: i32) -> (i32, i32, i32) {
    %c0_i32 = arith.constant 0 : i32
    %c0_i32_0 = arith.constant 0 : i32
    %c0_i32_1 = arith.constant 0 : i32
    return %arg0, %c0_i32, %c0_i32_0 : i32, i32, i32
  }
}

</mosaic_0001>

<bundles_post_ra>
// kernel: tpu_custom_call.1
= control target key start
LH: loop header
LB: loop body
LE: loop exit
PB: predicated region body
PF: predicated region fallthrough
CT: control target
= control target key end

     0   :  { %s4865_s0 = inlined_call_operand.hbm [shape: f32[2,8,32], index: 0, kind: input, shape index: {}]   ;;  %s4866_s1 = inlined_call_operand.hbm [shape: f32[2,8,32], index: 1, kind: input, shape index: {}]   ;;  %s4867_s2 = inlined_call_operand.vmem [shape: f32[32,32], index: 2, kind: input, shape index: {}]   ;;  %s4868_s3 = inlined_call_operand.vmem [shape: f32[32,32], index: 3, kind: input, shape index: {}]   ;;  %s4869_s4 = inlined_call_operand.vmem [shape: f32[1,32], index: 4, kind: input, shape index: {}]   ;;  %s4870_s5 = inlined_call_operand.vmem [shape: f32[1,32], index: 5, kind: input, shape index: {}]   ;;  %s4871_s6 = inlined_call_operand.vmem [shape: f32[1,32], index: 6, kind: input, shape index: {}]   ;;  %s4872_s7 = inlined_call_operand.vmem [shape: f32[32,32], index: 7, kind: input, shape index: {}]   ;;  %s4873_s8 = inlined_call_operand.hbm [shape: f32[32,32], index: 8, kind: input, shape index: {}]   ;;  %s4874_s9 = inlined_call_operand.vmem [shape: f32[1,32], index: 9, kind: input, shape index: {}]   ;;  %s4875_s10 = inlined_call_operand.vmem [shape: f32[1,32], index: 10, kind: input, shape index: {}]   ;;  %s4876_s11 = inlined_call_operand.vmem [shape: f32[1,32], index: 11, kind: input, shape index: {}]   ;;  %s4877_s12 = inlined_call_operand.hbm [shape: f32[32,64], index: 12, kind: input, shape index: {}]   ;;  %s4878_s13 = inlined_call_operand.vmem [shape: f32[64,32], index: 13, kind: input, shape index: {}]   ;;  %s4879_s14 = inlined_call_operand.vmem [shape: f32[1,32], index: 14, kind: input, shape index: {}]   ;;  %s4880_s15 = inlined_call_operand.vmem [shape: f32[1,32], index: 15, kind: input, shape index: {}]   ;;  %s4881_s16 = inlined_call_operand.hbm [shape: f32[2,8,32], index: 16, kind: output, shape index: {0}]   ;;  %s4882_s17 = inlined_call_operand.hbm [shape: f32[2,8,32], index: 17, kind: output, shape index: {1}]   ;;  %s4883_s18 = inlined_call_operand.hbm [shape: f32[2,8,32], index: 18, kind: output, shape index: {2}]  }
   0x1   :  { %4903 = sst [smem:[#allocation26_spill]] %s4865_s0 }
   0x2   :  { %4904 = sst [smem:[#allocation27_spill]] %s4866_s1 }
   0x3   :  { %4905 = sst [smem:[#allocation28_spill]] %s4867_s2 }
   0x4   :  { %4906 = sst [smem:[#allocation29_spill]] %s4868_s3 }
   0x5   :  { %4907 = sst [smem:[#allocation30_spill]] %s4869_s4 }
   0x6   :  { %4908 = sst [smem:[#allocation31_spill]] %s4870_s5 }
   0x7   :  { %4909 = sst [smem:[#allocation32_spill]] %s4873_s8 }
   0x8   :  { %4910 = sst [smem:[#allocation33_spill]] %s4876_s11 }
   0x9   :  { %4911 = sst [smem:[#allocation34_spill]] %s4877_s12 }
   0xa   :  { %4912 = sst [smem:[#allocation35_spill]] %s4879_s14 }
   0xb   :  { %4913 = sst [smem:[#allocation36_spill]] %s4880_s15 }
   0xc   :  { %4914 = sst [smem:[#allocation37_spill]] %s4881_s16 }
   0xd   :  { %4915 = sst [smem:[#allocation38_spill]] %s4882_s17 }
   0xe   :  { %4916 = sst [smem:[#allocation39_spill]] %s4883_s18 }
   0xf   :  { %24 = vsyncpa [#allocation3], 0 }
  0x10   :  { %26 = vsyncpa [#allocation3 + $0x1], 0 }
  0x11   :  { %27 = vsyncpa [#allocation6], 0 }
  0x12   :  { %29 = vsyncpa [#allocation6 + $0x1], 0 }
  0x13   :  { %30 = vsyncpa [#allocation9], 0 }
  0x14   :  { %31 = vsyncpa [#allocation4], 0 }
  0x15   :  { %33 = vsyncpa [#allocation4 + $0x1], 0 }
  0x16   :  { %34 = vsyncpa [#allocation12], 0 }
  0x17   :  { %36 = vsyncpa [#allocation12 + $0x1], 0  ;;  %s4189_s27 = smov 0   ;;  %s4191_s28 = smov 0  }
  0x18   :  { %s4193_s29 = smov 0   ;;  %s4195_s30 = smov 0  }
  0x19 LB: > { %4917 = sst [smem:[#allocation20_spill]] %s4062_s27  ;;  %s4210_s0 = sadd.s32 4294967295, %s4074_s30   ;;  %s4074_s30 = sphi %s4195_s30, %s4959_s30   ;;  %s4070_s29 = sphi %s4193_s29, %s4961_s29   ;;  %s4066_s28 = sphi %s4191_s28, %s4963_s28   ;;  %s4062_s27 = sphi %s4189_s27, %s4962_s27  }
  0x1a   : > { %4918 = sst [smem:[#allocation21_spill]] %s4070_s29  ;;  %s4887_s19 = sadd.s32 4294967294, %s4074_s30  }
  0x1b   : > { %p62_p0 = scmp.ne.s32.totalorder %s4066_s28, %s4062_s27  ;;  %p4891_p1 = scmp.eq.s32.totalorder %s4210_s0, 0 }
  0x1c   : > { %p412_p3 = scmp.eq.s32.totalorder %s4887_s19, 1  ;;  %p3324_p5 = scmp.ge.s32.totalorder %s4074_s30, 1 }
  0x1d   : > { %p4221_p4 = por %p4891_p1, %p62_p0  ;;  %p471_p7 = scmp.lt.s32.totalorder %s4074_s30, 3 }
  0x1e   : > { %p4226_p6 = por %p412_p3, %p62_p0  ;;  %s4076_s22 = smov [#allocation7]  }
  0x1f   : > { %s4919_s1 = scalar_select %p4221_p4, 1, 0 }
  0x20   : > { %s4920_s20 = scalar_select %p4226_p6, 1, 0 }
  0x21   : > { %p4231_p8 = pnand %p3324_p5, %p471_p7  ;;  %s501_s2 = sshll.u32 %s4076_s22, 4  ;;  %s4235_s2 = int_to_ptr.vmem [resolvable:$true] %s501_s2 }
  0x22   : > { %4921 = sst [smem:[#allocation22_spill]] %s4920_s20  ;;  %s4077_s24 = smov [#allocation8]  }
  0x23   : > { %s4922_s21 = scalar_select %p4231_p8, 1, 0 }
  0x24   : > { %p3707_p9 = pneg %p4231_p8  ;;  %s523_s25 = sshll.u32 %s4077_s24, 4  ;;  %s4246_s25 = int_to_ptr.vmem [resolvable:$true] %s523_s25 }
  0x25   : > { %s4924_s8 = sld [smem:[#allocation32_spill]] }
  0x26   : > { %p4242_p11 = pnand %p3707_p9, %p4891_p1 }
  0x28   : > { %p3822_p13 = pneg %p4242_p11 }
  0x2b   : > { %s3820_s22 = scalar_lea.hbm %s4924_s8, 512 }
  0x2c   : > { %p3821_p12 = scmp.ne.s32.totalorder %s4924_s8, %s3820_s22  ;;  %p3827_p5 = scmp.lt.u32.totalorder %s3820_s22, %s4924_s8 }
  0x2e   : > { %p3823_p0 = pnand %p3822_p13, %p3821_p12 }
  0x30   : > { %p3824_p3 = pneg %p3823_p0 }
  0x32   : > { %p3829_p7 = pnand %p3827_p5, %p3824_p3 }
  0x34   : > { %3832 = shalt.err (!%p3829_p7)
}
  0x35   : > { %s3833_s19 = scalar_lea.vmem %s4235_s2, 512  ;;  %p3841_p2 = scmp.lt.s32.totalorder %s4235_s2, %s4235_s2 }
  0x36   : > { %p3834_p9 = scmp.ne.s32.totalorder %s4235_s2, %s3833_s19  ;;  %p3842_p12 = scmp.lt.s32.totalorder %s3833_s19, %s3833_s19 }
  0x38   : > { %p3836_p10 = pnand %p3834_p9, %p3822_p13  ;;  %p3843_p0 = por %p3842_p12, %p3841_p2 }
  0x3a   : > { %p3837_p1 = pneg %p3836_p10 }
  0x3c   : > { %p3844_p6 = pnand %p3843_p0, %p3837_p1 }
  0x3e   : > { %3847 = shalt.err (!%p3844_p6)
}
  0x3f   : > { %s4078_s15 = smov 128   ;;  %s4079_s16 = smov 8  }
  0x40   : > { %3710 = dma.hbm_to_vmem [thread:$0]  (!%p4242_p11), %s4924_s8, 512, %s4235_s2, [#allocation6], %s4078_s15, %s4078_s15, %s4079_s16  }
  0x41   : > { %s4925_s12 = sld [smem:[#allocation34_spill]] }
  0x47   : > { %s3848_s22 = scalar_lea.hbm %s4925_s12, 512 }
  0x48   : > { %p3849_p2 = scmp.ne.s32.totalorder %s4925_s12, %s3848_s22  ;;  %p3855_p10 = scmp.lt.u32.totalorder %s3848_s22, %s4925_s12 }
  0x4a   : > { %p3851_p1 = pnand %p3849_p2, %p3822_p13 }
  0x4c   : > { %p3852_p6 = pneg %p3851_p1 }
  0x4e   : > { %p3857_p3 = pnand %p3855_p10, %p3852_p6 }
  0x50   : > { %3860 = shalt.err (!%p3857_p3)
}
  0x51   : > { %s3861_s2 = scalar_lea.vmem %s4246_s25, 512  ;;  %p3869_p12 = scmp.lt.s32.totalorder %s4246_s25, %s4246_s25 }
  0x52   : > { %p3862_p5 = scmp.ne.s32.totalorder %s4246_s25, %s3861_s2  ;;  %p3870_p0 = scmp.lt.s32.totalorder %s3861_s2, %s3861_s2 }
  0x54   : > { %p3864_p7 = pnand %p3862_p5, %p3822_p13  ;;  %p3871_p2 = por %p3870_p0, %p3869_p12 }
  0x56   : > { %p3865_p9 = pneg %p3864_p7 }
  0x58   : > { %p3872_p1 = pnand %p3871_p2, %p3865_p9 }
  0x5a   : > { %3875 = shalt.err (!%p3872_p1)
}
  0x5b   : > { %3713 = dma.hbm_to_vmem [thread:$0]  (!%p4242_p11), %s4925_s12, 512, %s4246_s25, [#allocation9], %s4078_s15, %s4078_s15, %s4079_s16  }
  0x5c   : > { %s4301_s18 = sadd.s32 1, %s4074_s30   ;;  %s49_s23 = sadd.s32 1, %s4070_s29 }
  0x5d   : > { %4926 = sst [smem:[#allocation23_spill]] %s4301_s18  ;;  %s46_s27 = ssub.s32 %s4074_s30, %s4301_s18 }
  0x5e   : > { %p56_p13 = scmp.ne.s32.totalorder %s4070_s29, %s4066_s28  ;;  %p47_p6 = scmp.eq.s32.totalorder %s46_s27, 0 }
  0x5f   : > { %p57_p10 = scmp.eq.s32.totalorder %s4074_s30, 0  ;;  %p4927_p3 = scmp.eq.s32.totalorder %s4210_s0, 1 }
  0x60   : > { %p3733_p7 = scmp.lt.s32.totalorder %s4074_s30, 2  ;;  %s546_s26 = sand.u32 1, %s4070_s29  }
  0x61   : > { %p4311_p5 = por %p4927_p3, %p56_p13  ;;  %p58_p9 = por %p57_p10, %p56_p13 }
  0x62   : > { %s4317_s24 = scalar_select %p47_p6, %s4070_s29, %s49_s23  }
  0x63   : > { %s4928_s20 = scalar_select %p4311_p5, 1, 0 }
  0x64   : > { %4930 = sst [smem:[#allocation25_spill]] %s4317_s24  ;;  %s4320_s25 = sshll.u32 %s546_s26, 3 }
  0x65   : > { %4929 = sst [smem:[#allocation24_spill]] %s4928_s20  ;;  %s3329_s15 = sshll.u32 %s4074_s30, 7 }
  0x66   : > { %s4931_s19 = sld [smem:[#allocation26_spill]]  ;;  %s550_s14 = scalar_lea.vmem [#allocation2], %s4320_s25 }
  0x67   : > { %s557_s17 = sshll.u32 %s550_s14, 4  ;;  %p4331_p11 = pnand %p3733_p7, %p58_p9  ;;  %s4329_s17 = int_to_ptr.vmem [resolvable:$true] %s557_s17 }
  0x68   : > { %s4933_s12 = sld [smem:[#allocation27_spill]]  ;;  %s564_s22 = sand.u32 1, %s4074_s30  }
  0x69   : > { %s547_s24 = scalar_lea.sflag [#allocation3], %s546_s26  ;;  %p3878_p0 = pneg %p4331_p11 }
  0x6c   : > { %s4326_s2 = scalar_lea.hbm %s4931_s19, %s3329_s15  ;;  %s3881_s20 = scalar_lea.hbm %s4931_s19, 256 }
  0x6d   : > { %s3876_s29 = scalar_lea.hbm %s4326_s2, 128  ;;  %p3882_p13 = scmp.lt.u32.totalorder %s4326_s2, %s4931_s19 }
  0x6e   : > { %s4338_s16 = scalar_lea.hbm %s4933_s12, %s3329_s15  ;;  %p3877_p12 = scmp.ne.s32.totalorder %s4326_s2, %s3876_s29 }
  0x6f   : > { %p3883_p6 = scmp.lt.u32.totalorder %s3881_s20, %s3876_s29  ;;  %p3885_p3 = scmp.lt.u32.totalorder %s3876_s29, %s4326_s2 }
  0x70   : > { %p3879_p2 = pnand %p3878_p0, %p3877_p12 }
  0x71   : > { %p3884_p10 = por %p3883_p6, %p3882_p13 }
  0x72   : > { %p3880_p1 = pneg %p3879_p2 }
  0x73   : > { %p3886_p7 = por %p3885_p3, %p3884_p10 }
  0x75   : > { %p3887_p9 = pnand %p3886_p7, %p3880_p1 }
  0x77   : > { %3890 = shalt.err (!%p3887_p9)
}
  0x78   : > { %s3891_s26 = scalar_lea.vmem %s4329_s17, 128  ;;  %s4080_s18 = smov [#allocation2]  }
  0x79   : > { %p3892_p12 = scmp.ne.s32.totalorder %s4329_s17, %s3891_s26  ;;  %s3896_s15 = sshll.u32 %s4080_s18, 4  ;;  %s3897_s15 = int_to_ptr.vmem [resolvable:$false] %s3896_s15 }
  0x7a   : > { %s3898_s11 = scalar_lea.vmem %s3897_s15, 256  ;;  %p3899_p4 = scmp.lt.s32.totalorder %s4329_s17, %s3897_s15 }
  0x7b   : > { %p3894_p2 = pnand %p3892_p12, %p3878_p0  ;;  %p3900_p13 = scmp.lt.s32.totalorder %s3898_s11, %s3891_s26 }
  0x7d   : > { %p3895_p5 = pneg %p3894_p2  ;;  %p3901_p6 = por %p3900_p13, %p3899_p4 }
  0x7f   : > { %p3902_p10 = pnand %p3901_p6, %p3895_p5 }
  0x81   : > { %3905 = shalt.err (!%p3902_p10)
}
  0x82   : > { %3717 = dma.hbm_to_vmem [thread:$0]  (!%p4331_p11), %s4326_s2, 128, %s4329_s17, %s547_s24  }
  0x83   : > { %s568_s29 = scalar_lea.vmem [#allocation5], %s4320_s25  ;;  %s565_s27 = scalar_lea.sflag [#allocation6], %s564_s22 }
  0x84   : > { %s575_s20 = sshll.u32 %s568_s29, 4  ;;  %s3906_s14 = scalar_lea.hbm %s4338_s16, 128  ;;  %s576_s20 = int_to_ptr.vmem [resolvable:$true] %s575_s20 }
  0x85   : > { %p3907_p4 = scmp.ne.s32.totalorder %s4338_s16, %s3906_s14  ;;  %s3911_s18 = scalar_lea.hbm %s4933_s12, 256 }
  0x86   : > { %p3912_p3 = scmp.lt.u32.totalorder %s4338_s16, %s4933_s12  ;;  %p3913_p7 = scmp.lt.u32.totalorder %s3911_s18, %s3906_s14 }
  0x87   : > { %p3909_p5 = pnand %p3907_p4, %p3878_p0  ;;  %p3915_p12 = scmp.lt.u32.totalorder %s3906_s14, %s4338_s16 }
  0x88   : > { %p3914_p9 = por %p3913_p7, %p3912_p3 }
  0x89   : > { %p3910_p1 = pneg %p3909_p5 }
  0x8a   : > { %p3916_p2 = por %p3915_p12, %p3914_p9 }
  0x8c   : > { %p3917_p13 = pnand %p3916_p2, %p3910_p1 }
  0x8e   : > { %3920 = shalt.err (!%p3917_p13)
}
  0x8f   : > { %s3921_s24 = scalar_lea.vmem %s576_s20, 128  ;;  %s4081_s25 = smov [#allocation5]  }
  0x90   : > { %p3922_p6 = scmp.ne.s32.totalorder %s576_s20, %s3921_s24  ;;  %s3926_s2 = sshll.u32 %s4081_s25, 4  ;;  %s3927_s2 = int_to_ptr.vmem [resolvable:$false] %s3926_s2 }
  0x91   : > { %s3928_s17 = scalar_lea.vmem %s3927_s2, 256  ;;  %p3929_p5 = scmp.lt.s32.totalorder %s576_s20, %s3927_s2 }
  0x92   : > { %p3924_p10 = pnand %p3922_p6, %p3878_p0  ;;  %p3930_p8 = scmp.lt.s32.totalorder %s3928_s17, %s3921_s24 }
  0x94   : > { %p3925_p4 = pneg %p3924_p10  ;;  %p3931_p3 = por %p3930_p8, %p3929_p5 }
  0x96   : > { %p3932_p7 = pnand %p3931_p3, %p3925_p4 }
  0x98   : > { %3935 = shalt.err (!%p3932_p7)
}
  0x99   : > { %3720 = dma.hbm_to_vmem [thread:$0]  (!%p4331_p11), %s4338_s16, 128, %s576_s20, %s565_s27  }
  0x9a   : > { %p4934_p1 = scmp.ne.s32.totalorder %s4922_s21, 0 }
  0x9b   : > { %s4391_s22 = sand.u32 (!%p4934_p1), 1, %s4066_s28   ;;  %p4935_p8 = scmp.ne.s32.totalorder (!%p4934_p1), %s4919_s1, 0 }
  0x9c   : > { %584 = sbr.rel (%p4934_p1) target bundleno = 7130 (0x1bda), region = 84  ;;  %s4394_s29 = sshll.u32 (!%p4934_p1), %s4391_s22, 3 }
  0x9d   : > { %s587_s14 = scalar_lea.sflag (!%p4934_p1), [#allocation3], %s4391_s22  ;;  %s590_s8 = scalar_lea.vmem (!%p4934_p1), [#allocation2], %s4394_s29 }
  0xa3   : > { %4037 = dma.done.wait (%p4935_p8), %s587_s14, 128  }
  0xa4   : > { %4039 = vsyncadd (%p4935_p8), %s587_s14, 4294967168  ;;  %s595_s21 = sand.u32 1, %s4210_s0   ;;  %s599_s16 = scalar_lea.vmem [#allocation5], %s4394_s29 }
  0xa5   : > { %s596_s23 = scalar_lea.sflag [#allocation6], %s595_s21 }
  0xa6   : > { %4041 = dma.done.wait (%p4935_p8), %s596_s23, 128  }
  0xa7   : > { %4043 = vsyncadd (%p4935_p8), %s596_s23, 4294967168  ;;  %p4936_p11 = scmp.eq.s32.totalorder %s4210_s0, 0 }
  0xa9   : > { %4045 = dma.done.wait (%p4936_p11), [#allocation6], 512   ;;  %p4937_p0 = pmov %p4936_p11 }
  0xab   : > { %4047 = vsyncadd (%p4937_p0), [#allocation6], 4294966784  ;;  %p4938_p9 = pmov %p4937_p0 }
  0xac   : > { %p4939_p12 = pmov %p4937_p0 }
  0xad   : > { %4049 = dma.done.wait (%p4938_p9), [#allocation9], 512  }
  0xae   : > { %4051 = vsyncadd (%p4939_p12), [#allocation9], 4294966784  ;;  %v4082_v0 = vmov 0.0|0.0   ;;  %vm4083_vm0 = vmmov 0   ;;  %v4084_v1 = vmov 0.0   ;;  %s4940_s27 = sld [smem:[#allocation28_spill]] }
  0xaf   : > { %3653 = vmatprep.subr.bf16.mxu0 %v4082_v0  ;;  %3478 = vmatprep.mubr.msk.f32.mxu0 %vm4083_vm0, %v4084_v1  ;;  %v4437_v8 = vld [vmem:[%s590_s8] sm:$0xff]  ;;  %vm681_vm1 = vcmask 261120   ;;  %vm763_vm2 = vcmask 64512   ;;  %s4085_s17 = smov 120   ;;  %s4942_s3 = sld [smem:[#allocation29_spill]]  ;;  %vm2995_vm3 = vcmask 523264  }
  0xb0   : > { %3486 = vmatprep.subr.mxu1 %v4084_v1  ;;  %3488 = vmatprep.mubr.msk.f32.mxu1 %vm4083_vm0, %v4084_v1  ;;  %s4086_s23 = smov 112   ;;  %s4087_s1 = smov 104   ;;  %vm1725_vm4 = vcmask 130048   ;;  %vm1727_vm5 = vcmask 195584  }
  0xb1   : > { %s4943_s4 = sld [smem:[#allocation30_spill]]  ;;  %s4944_s5 = sld [smem:[#allocation31_spill]] }
  0xb2   : > { %s4089_s8 = smov 8   ;;  %s4090_s20 = smov 24  }
  0xb3   : > { %s4945_s24 = sld [smem:[#allocation33_spill]]  ;;  %s4947_s11 = sld [smem:[#allocation38_spill]] }
  0xb4   : > { %s4941_s26 = smov %s4940_s27  ;;  %v677_v2 = vld [vmem:[%s4940_s27] sm:$0xff]  ;;  %s4756_s18 = scalar_lea.sflag [#allocation12], %s595_s21 }
  0xb5   : > { %v678_v3 = vld [vmem:[%s4941_s26 + $0x8] sm:$0xff]  ;;  %v679_v4 = vld [vmem:[%s4941_s26 + $0x10] sm:$0xff]  ;;  %v680_v6 = vld [vmem:[%s4941_s26 + $0x18] sm:$0xff] }
  0xb6   : > { %v3654_v5 = vpack.c.bf16 %v678_v3, %v677_v2  ;;  %v3657_v7 = vpack.c.bf16 %v680_v6, %v679_v4  ;;  %v756_v20 = vld [vmem:[%s4942_s3] sm:$0xff]  ;;  %v757_v36 = vld [vmem:[%s4942_s3 + $0x8] sm:$0xff]  ;;  %v758_v54 = vld [vmem:[%s4942_s3 + $0x10] sm:$0xff] }
  0xb7   : > { %v3345_v55 = vld [vmem:[%s4943_s4] ss:$0 sm:$0xff] }
  0xb8   : > { %3655 = vmatpush3.bf16.msra.mxu0 %v3654_v5 }
  0xb9   : > { %3656 = vmatprep.subr.bf16.mxu0 %v4082_v0 }
  0xbc   : > { %3658 = vmatpush3.bf16.msra.mxu0 %v3657_v7 }
  0xbd   : > { %3481 = vmatprep.subr.mxu0 %v4084_v1 }
  0xbf   : > { %3479 = vmatmul.mubr.msk.f32.vlgmr.msra.gmra.mrb[0].mxu0 %vm681_vm1, %v4437_v8 }
  0xc0   : > { %3483 = vmatprep.mubr.msk.f32.mxu0 %vm4083_vm0, %v4084_v1 }
 0x192   : > { %v751_v9 = vpop.f32.mrb[0].mxu0 }
 0x193   : > { %v4444_v10 = vmul.f32 0.35355338, %v751_v9  ;;  %1006 = vrot.lane.b32.xlu1 %v751_v9, %s4085_s17  ;;  %v3480_v11 = vpop.f32.mrb[1].mxu0  ;;  %3482 = vmatpush3.xpose.msk.msra.mxu0 %vm763_vm2, %v751_v9 }
 0x194   : > { %3487 = vmatpush3.msra.mxu1 %v751_v9  ;;  %3491 = vmatprep.subr.mxu0 %v4084_v1 }
 0x195   : > { %3496 = vmatprep.subr.mxu1 %v4084_v1 }
 0x196   : > { %3484 = vmatmul.mubr.msk.f32.vlgmr.msra.gmra.mrb[2].mxu0 %vm763_vm2, %v4444_v10 }
 0x197   : > { %1004 = vrot.lane.b32.xlu1 %v4444_v10, %s4085_s17  ;;  %3493 = vmatprep.mubr.msk.f32.mxu0 %vm4083_vm0, %v4084_v1 }
 0x198   : > { %3492 = vmatpush3.msra.mxu0 %v756_v20 }
 0x199   : > { %3501 = vmatprep.subr.mxu0 %v4084_v1 }
 0x205   : > { %v1007_v23 = vpop.permute.xlu1 %1006 }
 0x209   : > { %v1005_v25 = vpop.permute.xlu1 %1004 }
 0x269   : > { %v836_v12 = vpop.f32.mrb[2].mxu0 }
 0x26a   : > { %v3485_v13 = vpop.f32.mrb[3].mxu0  ;;  %v840_v14 = vsel %vm763_vm2, %v836_v12, -inf }
 0x26b   : > { %841 = vmax.xlane.f32.xlu0 %v840_v14  ;;  %v759_v14 = vld [vmem:[%s4942_s3 + $0x18] sm:$0xff] }
 0x2f8   : > { %v842_v15 = vpop.xlane.xlu0 %841 }
 0x2f9   : > { %v843_v16 = vsub.f32 %v836_v12, %v842_v15 }
 0x2fb   : > { %v844_v17 = vmul.f32 1.442695, %v843_v16 }
 0x2fd   : > { %3782 = vpow2.f32 %v844_v17 }
 0x307   : > { %v3783_v18 = vpop.eup %3782 }
 0x308   : > { %v846_v19 = vsel %vm763_vm2, %v3783_v18, 0.0 }
 0x309   : > { %847 = vadd.xlane.f32.xlu0 %v846_v19 }
 0x396   : > { %v848_v21 = vpop.xlane.xlu0 %847 }
 0x397   : > { %3784 = vrcp.f32 %v848_v21 }
 0x3a1   : > { %v3785_v22 = vpop.eup %3784 }
 0x3a2   : > { %v4462_v24 = vmul.f32 %v3785_v22, %v3783_v18 }
 0x3a4   : > { %3489 = vmatmul.mubr.msk.f32.vlgmr.msra.gmra.mrb[0].mxu1 %vm763_vm2, %v4462_v24 }
 0x3a5   : > { %3497 = vmatpush3.xpose.msk.msra.mxu1 %vm763_vm2, %v1007_v23  ;;  %3498 = vmatprep.mubr.msk.f32.mxu1 %vm4083_vm0, %v4084_v1 }
 0x3a6   : > { %3506 = vmatprep.subr.mxu1 %v4084_v1 }
 0x3a8   : > { %3499 = vmatmul.mubr.msk.f32.vlgmr.msra.gmra.mrb[2].mxu1 %vm763_vm2, %v1005_v25 }
 0x3a9   : > { %3508 = vmatprep.mubr.msk.f32.mxu1 %vm4083_vm0, %v4084_v1  ;;  %3507 = vmatpush3.msra.mxu1 %v757_v36  ;;  %v1761_v36 = vld [vmem:[%s4872_s7 + $0x10] sm:$0xff] }
 0x3aa   : > { %3516 = vmatprep.subr.mxu1 %v4084_v1 }
 0x477   : > { %v920_v26 = vpop.f32.mrb[0].mxu1 }
 0x478   : > { %v3490_v27 = vpop.f32.mrb[1].mxu1  ;;  %3494 = vmatmul.mubr.msk.f32.vlgmr.msra.gmra.mrb[4].mxu0 %vm763_vm2, %v920_v26 }
 0x479   : > { %3502 = vmatpush3.msra.mxu0 %v1007_v23  ;;  %3503 = vmatprep.mubr.msk.f32.mxu0 %vm4083_vm0, %v4084_v1 }
 0x47a   : > { %3511 = vmatprep.subr.mxu0 %v4084_v1 }
 0x47b   : > { %v1078_v28 = vpop.f32.mrb[2].mxu1 }
 0x47c   : > { %v3500_v29 = vpop.f32.mrb[3].mxu1  ;;  %v1082_v30 = vsel %vm763_vm2, %v1078_v28, -inf }
 0x47d   : > { %1083 = vmax.xlane.f32.xlu0 %v1082_v30 }
 0x493   : > { %1243 = vrot.lane.b32.xlu0 %v751_v9, %s4086_s23 }
 0x497   : > { %1241 = vrot.lane.b32.xlu0 %v4444_v10, %s4086_s23 }
 0x50a   : > { %v1084_v31 = vpop.xlane.xlu0 %1083 }
 0x50b   : > { %v1085_v32 = vsub.f32 %v1078_v28, %v1084_v31 }
 0x50d   : > { %v1086_v33 = vmul.f32 1.442695, %v1085_v32 }
 0x50e   : > { %v1244_v41 = vpop.permute.xlu0 %1243 }
 0x50f   : > { %3786 = vpow2.f32 %v1086_v33 }
 0x512   : > { %v1242_v43 = vpop.permute.xlu0 %1241 }
 0x519   : > { %v3787_v34 = vpop.eup %3786 }
 0x51a   : > { %v1088_v35 = vsel %vm763_vm2, %v3787_v34, 0.0 }
 0x51b   : > { %1089 = vadd.xlane.f32.xlu1 %v1088_v35  ;;  %v1760_v35 = vld [vmem:[%s4872_s7 + $0x8] sm:$0xff] }
 0x52c   : > { %1480 = vrot.lane.b32.xlu1 %v751_v9, %s4087_s1 }
 0x54b   : > { %v993_v37 = vpop.f32.mrb[4].mxu0 }
 0x54c   : > { %v3495_v38 = vpop.f32.mrb[5].mxu0  ;;  %v1003_v56 = vadd.f32 %v3345_v55, %v993_v37  ;;  %v1762_v37 = vld [vmem:[%s4872_s7 + $0x18] sm:$0xff] }
 0x54d   : > { %v3663_v38 = vpack.c.bf16 %v1762_v37, %v1761_v36 }
 0x5a8   : > { %v1090_v39 = vpop.xlane.xlu1 %1089 }
 0x5a9   : > { %3788 = vrcp.f32 %v1090_v39  ;;  %v676_v39 = vld [vmem:[%s599_s16] sm:$0xff]  ;;  %s4948_s16 = sld [smem:[#allocation39_spill]] }
 0x5ac   : > { %v1481_v60 = vpop.permute.xlu1 %1480 }
 0x5b3   : > { %v3789_v40 = vpop.eup %3788 }
 0x5b4   : > { %v4487_v42 = vmul.f32 %v3789_v40, %v3787_v34  ;;  %v1759_v34 = vld [vmem:[%s4872_s7] sm:$0xff] }
 0x5b6   : > { %3504 = vmatmul.mubr.msk.f32.vlgmr.msra.gmra.mrb[6].mxu0 %vm763_vm2, %v4487_v42 }
 0x5b7   : > { %3512 = vmatpush3.xpose.msk.msra.mxu0 %vm763_vm2, %v1244_v41  ;;  %3513 = vmatprep.mubr.msk.f32.mxu0 %vm4083_vm0, %v4084_v1 }
 0x5b8   : > { %3521 = vmatprep.subr.mxu0 %v4084_v1 }
 0x5ba   : > { %3514 = vmatmul.mubr.msk.f32.vlgmr.msra.gmra.mrb[8].mxu0 %vm763_vm2, %v1242_v43 }
 0x5bb   : > { %3523 = vmatprep.mubr.msk.f32.mxu0 %vm4083_vm0, %v4084_v1  ;;  %3522 = vmatpush3.msra.mxu0 %v758_v54 }
 0x5bc   : > { %3531 = vmatprep.subr.mxu0 %v4084_v1 }
 0x689   : > { %v1163_v44 = vpop.f32.mrb[6].mxu0 }
 0x68a   : > { %v3505_v45 = vpop.f32.mrb[7].mxu0  ;;  %3509 = vmatmul.mubr.msk.f32.vlgmr.msra.gmra.mrb[4].mxu1 %vm763_vm2, %v1163_v44 }
 0x68b   : > { %3517 = vmatpush3.msra.mxu1 %v1244_v41  ;;  %3518 = vmatprep.mubr.msk.f32.mxu1 %vm4083_vm0, %v4084_v1  ;;  %v3358_v45 = vld [vmem:[%s4944_s5] ss:$0 sm:$0xff] }
 0x68c   : > { %3526 = vmatprep.subr.mxu1 %v4084_v1 }
 0x68d   : > { %v1315_v46 = vpop.f32.mrb[8].mxu0 }
 0x68e   : > { %v3515_v47 = vpop.f32.mrb[9].mxu0  ;;  %v1319_v48 = vsel %vm763_vm2, %v1315_v46, -inf }
 0x68f   : > { %1320 = vmax.xlane.f32.xlu0 %v1319_v48  ;;  %v3359_v47 = vld [vmem:[%s4871_s6] ss:$0 sm:$0xff] }
 0x71c   : > { %v1321_v49 = vpop.xlane.xlu0 %1320 }
 0x71d   : > { %v1322_v50 = vsub.f32 %v1315_v46, %v1321_v49 }
 0x71f   : > { %v1323_v51 = vmul.f32 1.442695, %v1322_v50 }
 0x721   : > { %3790 = vpow2.f32 %v1323_v51 }
 0x72b   : > { %v3791_v52 = vpop.eup %3790 }
 0x72c   : > { %v1325_v53 = vsel %vm763_vm2, %v3791_v52, 0.0 }
 0x72d   : > { %1326 = vadd.xlane.f32.xlu1 %v1325_v53 }
 0x73e   : > { %1478 = vrot.lane.b32.xlu1 %v4444_v10, %s4087_s1 }
 0x75d   : > { %v1236_v57 = vpop.f32.mrb[4].mxu1 }
 0x75e   : > { %v1240_v58 = vadd.f32 %v1236_v57, %v1003_v56  ;;  %v3510_v59 = vpop.f32.mrb[5].mxu1 }
 0x7ba   : > { %v1327_v61 = vpop.xlane.xlu1 %1326 }
 0x7bb   : > { %3792 = vrcp.f32 %v1327_v61 }
 0x7be   : > { %v1479_v2 = vpop.permute.xlu1 %1478 }
 0x7c5   : > { %v3793_v62 = vpop.eup %3792 }
 0x7c6   : > { %v4513_v63 = vmul.f32 %v3793_v62, %v3791_v52 }
 0x7c8   : > { %3519 = vmatmul.mubr.msk.f32.vlgmr.msra.gmra.mrb[6].mxu1 %vm763_vm2, %v4513_v63 }
 0x7c9   : > { %3527 = vmatpush3.xpose.msk.msra.mxu1 %vm763_vm2, %v1481_v60  ;;  %3528 = vmatprep.mubr.msk.f32.mxu1 %vm4083_vm0, %v4084_v1 }
 0x7ca   : > { %3536 = vmatprep.subr.mxu1 %v4084_v1 }
 0x7cc   : > { %3529 = vmatmul.mubr.msk.f32.vlgmr.msra.gmra.mrb[8].mxu1 %vm763_vm2, %v1479_v2  ;;  %v1910_v2 = vld [vmem:[#allocation7] sm:$0xff] }
 0x7cd   : > { %3538 = vmatprep.mubr.msk.f32.mxu1 %vm4083_vm0, %v4084_v1  ;;  %3537 = vmatpush3.msra.mxu1 %v759_v14 }
 0x7ce   : > { %3665 = vmatprep.subr.bf16.mxu1 %v4082_v0 }
 0x89b   : > { %v1400_v3 = vpop.f32.mrb[6].mxu1 }
 0x89c   : > { %v3520_v4 = vpop.f32.mrb[7].mxu1  ;;  %3524 = vmatmul.mubr.msk.f32.vlgmr.msra.gmra.mrb[10].mxu0 %vm763_vm2, %v1400_v3 }
 0x89d   : > { %3532 = vmatpush3.msra.mxu0 %v1481_v60  ;;  %3533 = vmatprep.mubr.msk.f32.mxu0 %vm4083_vm0, %v4084_v1 }
 0x89e   : > { %3659 = vmatprep.subr.bf16.mxu0 %v4082_v0 }
 0x89f   : > { %v1552_v5 = vpop.f32.mrb[8].mxu1 }
 0x8a0   : > { %v3530_v6 = vpop.f32.mrb[9].mxu1  ;;  %v1556_v7 = vsel %vm763_vm2, %v1552_v5, -inf }
 0x8a1   : > { %1557 = vmax.xlane.f32.xlu0 %v1556_v7 }
 0x92e   : > { %v1558_v9 = vpop.xlane.xlu0 %1557 }
 0x92f   : > { %v1559_v10 = vsub.f32 %v1552_v5, %v1558_v9 }
 0x931   : > { %v1560_v11 = vmul.f32 1.442695, %v1559_v10 }
 0x933   : > { %3794 = vpow2.f32 %v1560_v11 }
 0x93d   : > { %v3795_v12 = vpop.eup %3794 }
 0x93e   : > { %v1562_v13 = vsel %vm763_vm2, %v3795_v12, 0.0 }
 0x93f   : > { %1563 = vadd.xlane.f32.xlu1 %v1562_v13 }
 0x96f   : > { %v1473_v15 = vpop.f32.mrb[10].mxu0 }
 0x970   : > { %v1477_v16 = vadd.f32 %v1473_v15, %v1240_v58  ;;  %v3525_v17 = vpop.f32.mrb[11].mxu0 }
 0x9cc   : > { %v1564_v18 = vpop.xlane.xlu1 %1563 }
 0x9cd   : > { %3796 = vrcp.f32 %v1564_v18 }
 0x9d7   : > { %v3797_v19 = vpop.eup %3796 }
 0x9d8   : > { %v4534_v20 = vmul.f32 %v3797_v19, %v3795_v12  ;;  %v1911_v19 = vld [vmem:[#allocation7 + $0x8] sm:$0xff] }
 0x9da   : > { %3534 = vmatmul.mubr.msk.f32.vlgmr.msra.gmra.mrb[12].mxu0 %vm763_vm2, %v4534_v20 }
 0x9db   : > { %3549 = vmatprep.mubr.msk.f32.mxu0 %vm4083_vm0, %v4084_v1 }
 0xaad   : > { %v1637_v21 = vpop.f32.mrb[12].mxu0 }
 0xaae   : > { %v3535_v22 = vpop.f32.mrb[13].mxu0  ;;  %3539 = vmatmul.mubr.msk.f32.vlgmr.msra.gmra.mrb[10].mxu1 %vm763_vm2, %v1637_v21 }
 0xaaf   : > { %3560 = vmatprep.mubr.msk.f32.mxu1 %vm4083_vm0, %v4084_v1 }
 0xb81   : > { %v1710_v23 = vpop.f32.mrb[10].mxu1 }
 0xb82   : > { %v1714_v25 = vadd.f32 %v1710_v23, %v1477_v16  ;;  %v3540_v26 = vpop.f32.mrb[11].mxu1 }
 0xb84   : > { %v1730_v27 = vadd.f32 %v1714_v25, %v4437_v8  ;;  %v3660_v8 = vpack.c.bf16 %v1760_v35, %v1759_v34 }
 0xb86   : > { %v1731_v28 = vsel %vm681_vm1, %v1730_v27, 0.0  ;;  %3667 = vmatpush3.bf16.msra.mxu1 %v3660_v8  ;;  %3661 = vmatpush3.bf16.msra.mxu0 %v3660_v8 }
 0xb87   : > { %1732 = vadd.xlane.f32.xlu0 %v1731_v28  ;;  %3668 = vmatprep.subr.bf16.mxu1 %v4082_v0 }
 0xb88   : > { %3662 = vmatprep.subr.bf16.mxu0 %v4082_v0 }
 0xb8a   : > { %3670 = vmatpush3.bf16.msra.mxu1 %v3663_v38  ;;  %3664 = vmatpush3.bf16.msra.mxu0 %v3663_v38  ;;  %v1912_v38 = vld [vmem:[#allocation7 + $0x10] sm:$0xff] }
 0xb8b   : > { %3563 = vmatprep.subr.mxu0 %v4084_v1  ;;  %3568 = vmatprep.subr.mxu1 %v4084_v1 }
 0xb8d   : > { %3561 = vmatmul.mubr.msk.f32.vlgmr.msra.gmra.mrb[12].mxu1 %vm681_vm1, %v676_v39  ;;  %v3366_v39 = vld [vmem:[%s4874_s9] ss:$0 sm:$0xff] }
 0xb8e   : > { %3570 = vmatprep.mubr.msk.f32.mxu1 %vm4083_vm0, %v4084_v1 }
 0xc14   : > { %v1733_v29 = vpop.xlane.xlu0 %1732 }
 0xc15   : > { %v1735_v30 = vmul.f32 0.03125, %v1733_v29 }
 0xc17   : > { %v1736_v31 = vsub.f32 %v1730_v27, %v1735_v30 }
 0xc19   : > { %v1737_v32 = vmul.f32 %v1736_v31, %v1736_v31 }
 0xc1b   : > { %v1738_v33 = vsel %vm681_vm1, %v1737_v32, 0.0 }
 0xc1c   : > { %1739 = vadd.xlane.f32.xlu0 %v1738_v33 }
 0xc60   : > { %v4579_v50 = vpop.f32.mrb[12].mxu1 }
 0xc61   : > { %v3562_v51 = vpop.f32.mrb[13].mxu1  ;;  %3569 = vmatpush3.msra.mxu1 %v4579_v50 }
 0xc62   : > { %3578 = vmatprep.subr.mxu1 %v4084_v1 }
 0xca9   : > { %v1740_v40 = vpop.xlane.xlu0 %1739 }
 0xcaa   : > { %v1741_v41 = vmul.f32 0.03125, %v1740_v40 }
 0xcac   : > { %v1742_v43 = vadd.f32 1e-05, %v1741_v41 }
 0xcae   : > { %3798 = vrsqrt.f32 %v1742_v43 }
 0xcb8   : > { %v3799_v44 = vpop.eup %3798 }
 0xcb9   : > { %v1744_v46 = vmul.f32 %v3799_v44, %v1736_v31 }
 0xcbb   : > { %v1751_v48 = vmul.f32 %v3358_v45, %v1744_v46 }
 0xcbd   : > { %v4573_v49 = vadd.f32 %v3359_v47, %v1751_v48 }
 0xcbf   : > { %3550 = vmatmul.mubr.msk.f32.vlgmr.msra.gmra.mrb[14].mxu0 %vm681_vm1, %v4573_v49 }
 0xcc0   : > { %3565 = vmatprep.mubr.msk.f32.mxu0 %vm4083_vm0, %v4084_v1  ;;  %3564 = vmatpush3.xpose.msk.msra.mxu0 %vm763_vm2, %v4579_v50 }
 0xcc1   : > { %3573 = vmatprep.subr.mxu0 %v4084_v1 }
 0xd92   : > { %v1832_v52 = vpop.f32.mrb[14].mxu0 }
 0xd93   : > { %v4586_v53 = vmul.f32 0.35355338, %v1832_v52  ;;  %v3551_v54 = vpop.f32.mrb[15].mxu0 }
 0xd95   : > { %2157 = vrot.lane.b32.xlu1 %v4586_v53, %s4085_s17  ;;  %3566 = vmatmul.mubr.msk.f32.vlgmr.msra.gmra.mrb[16].mxu0 %vm763_vm2, %v4586_v53 }
 0xd96   : > { %3575 = vmatprep.mubr.msk.f32.mxu0 %vm4083_vm0, %v4084_v1  ;;  %3574 = vmatpush3.msra.mxu0 %v1910_v2 }
 0xd97   : > { %3583 = vmatprep.subr.mxu0 %v4084_v1 }
 0xe07   : > { %v2158_v7 = vpop.permute.xlu1 %2157 }
 0xe68   : > { %v1989_v55 = vpop.f32.mrb[16].mxu0 }
 0xe69   : > { %v3567_v56 = vpop.f32.mrb[17].mxu0  ;;  %v1993_v57 = vsel %vm763_vm2, %v1989_v55, -inf }
 0xe6a   : > { %1994 = vmax.xlane.f32.xlu0 %v1993_v57 }
 0xef7   : > { %v1995_v58 = vpop.xlane.xlu0 %1994 }
 0xef8   : > { %v1996_v59 = vsub.f32 %v1989_v55, %v1995_v58 }
 0xefa   : > { %v1997_v60 = vmul.f32 1.442695, %v1996_v59 }
 0xefc   : > { %3800 = vpow2.f32 %v1997_v60 }
 0xf06   : > { %v3801_v61 = vpop.eup %3800 }
 0xf07   : > { %v1999_v62 = vsel %vm763_vm2, %v3801_v61, 0.0 }
 0xf08   : > { %2000 = vadd.xlane.f32.xlu0 %v1999_v62 }
 0xf1e   : > { %2159 = vrot.lane.b32.xlu0 %v4579_v50, %s4085_s17  ;;  %s4724_s17 = sshll.u32 %s4210_s0, 7 }
 0xf1f   : > { %s4749_s14 = scalar_lea.hbm %s4948_s16, %s4724_s17 }
 0xf95   : > { %v2001_v3 = vpop.xlane.xlu0 %2000 }
 0xf96   : > { %3802 = vrcp.f32 %v2001_v3 }
 0xf99   : > { %v2160_v6 = vpop.permute.xlu0 %2159 }
 0xfa0   : > { %v3803_v4 = vpop.eup %3802 }
 0xfa1   : > { %v4599_v5 = vmul.f32 %v3803_v4, %v3801_v61  ;;  %v1913_v4 = vld [vmem:[#allocation7 + $0x18] sm:$0xff] }
 0xfa3   : > { %3571 = vmatmul.mubr.msk.f32.vlgmr.msra.gmra.mrb[14].mxu1 %vm763_vm2, %v4599_v5 }
 0xfa4   : > { %3579 = vmatpush3.xpose.msk.msra.mxu1 %vm763_vm2, %v2160_v6  ;;  %3580 = vmatprep.mubr.msk.f32.mxu1 %vm4083_vm0, %v4084_v1 }
 0xfa5   : > { %3588 = vmatprep.subr.mxu1 %v4084_v1 }
 0xfa7   : > { %3581 = vmatmul.mubr.msk.f32.vlgmr.msra.gmra.mrb[16].mxu1 %vm763_vm2, %v2158_v7 }
 0xfa8   : > { %3590 = vmatprep.mubr.msk.f32.mxu1 %vm4083_vm0, %v4084_v1  ;;  %3589 = vmatpush3.msra.mxu1 %v1911_v19  ;;  %v2909_v19 = vld [vmem:[#allocation8] sm:$0xff] }
 0xfa9   : > { %3598 = vmatprep.subr.mxu1 %v4084_v1 }
0x1076   : > { %v2073_v9 = vpop.f32.mrb[14].mxu1 }
0x1077   : > { %v3572_v10 = vpop.f32.mrb[15].mxu1  ;;  %3576 = vmatmul.mubr.msk.f32.vlgmr.msra.gmra.mrb[18].mxu0 %vm763_vm2, %v2073_v9 }
0x1078   : > { %3584 = vmatpush3.msra.mxu0 %v2160_v6  ;;  %3585 = vmatprep.mubr.msk.f32.mxu0 %vm4083_vm0, %v4084_v1 }
0x1079   : > { %3593 = vmatprep.subr.mxu0 %v4084_v1 }
0x107a   : > { %v2231_v11 = vpop.f32.mrb[16].mxu1 }
0x107b   : > { %v3582_v12 = vpop.f32.mrb[17].mxu1  ;;  %v2235_v13 = vsel %vm763_vm2, %v2231_v11, -inf }
0x107c   : > { %2236 = vmax.xlane.f32.xlu0 %v2235_v13 }
0x1092   : > { %2396 = vrot.lane.b32.xlu0 %v4579_v50, %s4086_s23 }
0x1109   : > { %v2237_v14 = vpop.xlane.xlu0 %2236 }
0x110a   : > { %v2238_v15 = vsub.f32 %v2231_v11, %v2237_v14 }
0x110c   : > { %v2239_v16 = vmul.f32 1.442695, %v2238_v15 }
0x110d   : > { %v2397_v27 = vpop.permute.xlu0 %2396 }
0x110e   : > { %3804 = vpow2.f32 %v2239_v16 }
0x1118   : > { %v3805_v17 = vpop.eup %3804 }
0x1119   : > { %v2241_v18 = vsel %vm763_vm2, %v3805_v17, 0.0 }
0x111a   : > { %2242 = vadd.xlane.f32.xlu1 %v2241_v18 }
0x112b   : > { %2394 = vrot.lane.b32.xlu1 %v4586_v53, %s4086_s23  ;;  %s667_s23 = scalar_lea.vmem [#allocation11], %s4394_s29 }
0x114a   : > { %v2146_v21 = vpop.f32.mrb[18].mxu0 }
0x114b   : > { %v3577_v22 = vpop.f32.mrb[19].mxu0  ;;  %v2156_v40 = vadd.f32 %v3366_v39, %v2146_v21  ;;  %v2910_v21 = vld [vmem:[#allocation8 + $0x8] sm:$0xff]  ;;  %v3380_v39 = vld [vmem:[%s4945_s24] ss:$0 sm:$0xff]  ;;  %s4737_s24 = scalar_lea.hbm %s4947_s11, %s4724_s17 }
0x114c   : > { %v3672_v22 = vpack.c.bf16 %v2910_v21, %v2909_v19 }
0x11a7   : > { %v2243_v23 = vpop.xlane.xlu1 %2242 }
0x11a8   : > { %3806 = vrcp.f32 %v2243_v23  ;;  %v2912_v23 = vld [vmem:[#allocation8 + $0x18] sm:$0xff] }
0x11ab   : > { %v2395_v28 = vpop.permute.xlu1 %2394 }
0x11b2   : > { %v3807_v25 = vpop.eup %3806 }
0x11b3   : > { %v4621_v26 = vmul.f32 %v3807_v25, %v3805_v17 }
0x11b5   : > { %3586 = vmatmul.mubr.msk.f32.vlgmr.msra.gmra.mrb[20].mxu0 %vm763_vm2, %v4621_v26 }
0x11b6   : > { %3594 = vmatpush3.xpose.msk.msra.mxu0 %vm763_vm2, %v2397_v27  ;;  %3595 = vmatprep.mubr.msk.f32.mxu0 %vm4083_vm0, %v4084_v1 }
0x11b7   : > { %3603 = vmatprep.subr.mxu0 %v4084_v1 }
0x11b9   : > { %3596 = vmatmul.mubr.msk.f32.vlgmr.msra.gmra.mrb[22].mxu0 %vm763_vm2, %v2395_v28 }
0x11ba   : > { %3605 = vmatprep.mubr.msk.f32.mxu0 %vm4083_vm0, %v4084_v1  ;;  %3604 = vmatpush3.msra.mxu0 %v1912_v38 }
0x11bb   : > { %3613 = vmatprep.subr.mxu0 %v4084_v1 }
0x1288   : > { %v2316_v29 = vpop.f32.mrb[20].mxu0 }
0x1289   : > { %v3587_v30 = vpop.f32.mrb[21].mxu0  ;;  %3591 = vmatmul.mubr.msk.f32.vlgmr.msra.gmra.mrb[18].mxu1 %vm763_vm2, %v2316_v29  ;;  %v2990_v29 = vld [vmem:[%s4878_s13 + $0x18] sm:$0xff] }
0x128a   : > { %3599 = vmatpush3.msra.mxu1 %v2397_v27  ;;  %3600 = vmatprep.mubr.msk.f32.mxu1 %vm4083_vm0, %v4084_v1  ;;  %v2989_v27 = vld [vmem:[%s4878_s13 + $0x10] sm:$0xff] }
0x128b   : > { %3608 = vmatprep.subr.mxu1 %v4084_v1  ;;  %v3681_v30 = vpack.c.bf16 %v2990_v29, %v2989_v27 }
0x128c   : > { %v2468_v31 = vpop.f32.mrb[22].mxu0 }
0x128d   : > { %v3597_v32 = vpop.f32.mrb[23].mxu0  ;;  %v2472_v33 = vsel %vm763_vm2, %v2468_v31, -inf }
0x128e   : > { %2473 = vmax.xlane.f32.xlu0 %v2472_v33  ;;  %v2992_v32 = vld [vmem:[%s4878_s13 + $0x28] sm:$0xff] }
0x12a4   : > { %2633 = vrot.lane.b32.xlu0 %v4579_v50, %s4087_s1 }
0x131b   : > { %v2474_v34 = vpop.xlane.xlu0 %2473 }
0x131c   : > { %v2475_v35 = vsub.f32 %v2468_v31, %v2474_v34  ;;  %v2991_v31 = vld [vmem:[%s4878_s13 + $0x20] sm:$0xff] }
0x131d   : > { %v3684_v33 = vpack.c.bf16 %v2992_v32, %v2991_v31 }
0x131e   : > { %v2476_v8 = vmul.f32 1.442695, %v2475_v35 }
0x131f   : > { %v2634_v48 = vpop.permute.xlu0 %2633 }
0x1320   : > { %3808 = vpow2.f32 %v2476_v8 }
0x132a   : > { %v3809_v36 = vpop.eup %3808 }
0x132b   : > { %v2478_v37 = vsel %vm763_vm2, %v3809_v36, 0.0 }
0x132c   : > { %2479 = vadd.xlane.f32.xlu1 %v2478_v37  ;;  %v3379_v37 = vld [vmem:[%s4875_s10] ss:$0 sm:$0xff] }
0x133d   : > { %2631 = vrot.lane.b32.xlu1 %v4586_v53, %s4087_s1  ;;  %s4088_s1 = smov 16  }
0x135c   : > { %v2389_v41 = vpop.f32.mrb[18].mxu1 }
0x135d   : > { %v2393_v43 = vadd.f32 %v2389_v41, %v2156_v40  ;;  %v3592_v44 = vpop.f32.mrb[19].mxu1 }
0x13b9   : > { %v2480_v45 = vpop.xlane.xlu1 %2479 }
0x13ba   : > { %3810 = vrcp.f32 %v2480_v45 }
0x13bd   : > { %v2632_v50 = vpop.permute.xlu1 %2631 }
0x13c4   : > { %v3811_v46 = vpop.eup %3810 }
0x13c5   : > { %v4646_v47 = vmul.f32 %v3811_v46, %v3809_v36 }
0x13c7   : > { %3601 = vmatmul.mubr.msk.f32.vlgmr.msra.gmra.mrb[20].mxu1 %vm763_vm2, %v4646_v47 }
0x13c8   : > { %3609 = vmatpush3.xpose.msk.msra.mxu1 %vm763_vm2, %v2634_v48  ;;  %3610 = vmatprep.mubr.msk.f32.mxu1 %vm4083_vm0, %v4084_v1 }
0x13c9   : > { %3618 = vmatprep.subr.mxu1 %v4084_v1 }
0x13cb   : > { %3611 = vmatmul.mubr.msk.f32.vlgmr.msra.gmra.mrb[22].mxu1 %vm763_vm2, %v2632_v50 }
0x13cc   : > { %3620 = vmatprep.mubr.msk.f32.mxu1 %vm4083_vm0, %v4084_v1  ;;  %3619 = vmatpush3.msra.mxu1 %v1913_v4 }
0x13cd   : > { %3677 = vmatprep.subr.bf16.mxu1 %v4082_v0 }
0x149a   : > { %v2553_v51 = vpop.f32.mrb[20].mxu1 }
0x149b   : > { %v3602_v52 = vpop.f32.mrb[21].mxu1  ;;  %3606 = vmatmul.mubr.msk.f32.vlgmr.msra.gmra.mrb[24].mxu0 %vm763_vm2, %v2553_v51 }
0x149c   : > { %3614 = vmatpush3.msra.mxu0 %v2634_v48  ;;  %3615 = vmatprep.mubr.msk.f32.mxu0 %vm4083_vm0, %v4084_v1 }
0x149d   : > { %3671 = vmatprep.subr.bf16.mxu0 %v4082_v0 }
0x149e   : > { %v2705_v53 = vpop.f32.mrb[22].mxu1 }
0x149f   : > { %v3612_v54 = vpop.f32.mrb[23].mxu1  ;;  %v2709_v55 = vsel %vm763_vm2, %v2705_v53, -inf }
0x14a0   : > { %2710 = vmax.xlane.f32.xlu0 %v2709_v55 }
0x152d   : > { %v2711_v56 = vpop.xlane.xlu0 %2710 }
0x152e   : > { %v2712_v57 = vsub.f32 %v2705_v53, %v2711_v56 }
0x1530   : > { %v2713_v58 = vmul.f32 1.442695, %v2712_v57 }
0x1532   : > { %3812 = vpow2.f32 %v2713_v58 }
0x153c   : > { %v3813_v59 = vpop.eup %3812 }
0x153d   : > { %v2715_v60 = vsel %vm763_vm2, %v3813_v59, 0.0 }
0x153e   : > { %2716 = vadd.xlane.f32.xlu1 %v2715_v60 }
0x154f   : > { %1718 = vrot.lane.b32.xlu1 %v4513_v63, %s4088_s1 }
0x1553   : > { %2868 = vrot.lane.b32.xlu1 %v4621_v26, %s4089_s8  ;;  %v2988_v26 = vld [vmem:[%s4878_s13 + $0x8] sm:$0xff] }
0x1557   : > { %1721 = vrot.lane.b32.xlu1 %v4534_v20, %s4090_s20 }
0x156e   : > { %v2626_v61 = vpop.f32.mrb[24].mxu0 }
0x156f   : > { %v2630_v62 = vadd.f32 %v2626_v61, %v2393_v43  ;;  %v3607_v2 = vpop.f32.mrb[25].mxu0  ;;  %v2994_v43 = vld [vmem:[%s4878_s13 + $0x38] sm:$0xff] }
0x15cb   : > { %v2717_v3 = vpop.xlane.xlu1 %2716 }
0x15cc   : > { %3814 = vrcp.f32 %v2717_v3 }
0x15d6   : > { %v3815_v6 = vpop.eup %3814 }
0x15d7   : > { %v2719_v7 = vmul.f32 %v3815_v6, %v3813_v59  ;;  %v1719_v59 = vpop.permute.xlu1 %1718 }
0x15d9   : > { %2874 = vrot.lane.b32.xlu1 %v2719_v7, %s4090_s20  ;;  %3616 = vmatmul.mubr.msk.f32.vlgmr.msra.gmra.mrb[26].mxu0 %vm763_vm2, %v2719_v7  ;;  %s3137_s20 = sshll.u32 %s667_s23, 4  ;;  %s4739_s20 = int_to_ptr.vmem [resolvable:$true] %s3137_s20 }
0x15da   : > { %3631 = vmatprep.mubr.msk.f32.mxu0 %vm4083_vm0, %v4084_v1  ;;  %3673 = vmatpush3.bf16.msra.mxu0 %v3672_v22  ;;  %s3936_s15 = scalar_lea.vmem %s4739_s20, 128 }
0x15db   : > { %3674 = vmatprep.subr.bf16.mxu0 %v4082_v0  ;;  %v2869_v60 = vpop.permute.xlu1 %2868  ;;  %p3937_p2 = scmp.ne.s32.totalorder %s4739_s20, %s3936_s15 }
0x16ac   : > { %v2790_v63 = vpop.f32.mrb[26].mxu0 }
0x16ad   : > { %v3617_v9 = vpop.f32.mrb[27].mxu0  ;;  %3621 = vmatmul.mubr.msk.f32.vlgmr.msra.gmra.mrb[24].mxu1 %vm763_vm2, %v2790_v63 }
0x16ae   : > { %3650 = vmatprep.mubr.msk.f32.mxu1 %vm4083_vm0, %v4084_v1  ;;  %v2911_v1 = vld [vmem:[#allocation8 + $0x10] sm:$0xff] }
0x16af   : > { %v3675_v25 = vpack.c.bf16 %v2912_v23, %v2911_v1 }
0x16b1   : > { %3676 = vmatpush3.bf16.msra.mxu0 %v3675_v25 }
0x1780   : > { %v2863_v20 = vpop.f32.mrb[24].mxu1 }
0x1781   : > { %v2867_v10 = vadd.f32 %v2863_v20, %v2630_v62  ;;  %v3622_v11 = vpop.f32.mrb[25].mxu1 }
0x1783   : > { %v2881_v12 = vadd.f32 %v2867_v10, %v4573_v49  ;;  %v2987_v49 = vld [vmem:[%s4878_s13] sm:$0xff] }
0x1784   : > { %v3678_v28 = vpack.c.bf16 %v2988_v26, %v2987_v49 }
0x1785   : > { %v2882_v13 = vsel %vm681_vm1, %v2881_v12, 0.0 }
0x1786   : > { %2883 = vadd.xlane.f32.xlu0 %v2882_v13  ;;  %3679 = vmatpush3.bf16.msra.mxu1 %v3678_v28 }
0x1787   : > { %3680 = vmatprep.subr.bf16.mxu1 %v4082_v0 }
0x178a   : > { %3682 = vmatpush3.bf16.msra.mxu1 %v3681_v30 }
0x178b   : > { %3683 = vmatprep.subr.bf16.mxu1 %v4082_v0 }
0x178e   : > { %3685 = vmatpush3.bf16.msra.mxu1 %v3684_v33 }
0x178f   : > { %3686 = vmatprep.subr.bf16.mxu1 %v4082_v0  ;;  %v2993_v0 = vld [vmem:[%s4878_s13 + $0x30] sm:$0xff] }
0x1790   : > { %v3687_v44 = vpack.c.bf16 %v2994_v43, %v2993_v0 }
0x1792   : > { %3688 = vmatpush3.bf16.msra.mxu1 %v3687_v44 }
0x1813   : > { %v2884_v14 = vpop.xlane.xlu0 %2883 }
0x1814   : > { %v2885_v15 = vmul.f32 0.03125, %v2884_v14 }
0x1816   : > { %v2886_v16 = vsub.f32 %v2881_v12, %v2885_v15 }
0x1818   : > { %v2887_v17 = vmul.f32 %v2886_v16, %v2886_v16 }
0x181a   : > { %v2888_v18 = vsel %vm681_vm1, %v2887_v17, 0.0 }
0x181b   : > { %2889 = vadd.xlane.f32.xlu0 %v2888_v18 }
0x18a8   : > { %v2890_v34 = vpop.xlane.xlu0 %2889 }
0x18a9   : > { %v2891_v35 = vmul.f32 0.03125, %v2890_v34 }
0x18ab   : > { %v2892_v8 = vadd.f32 1e-05, %v2891_v35 }
0x18ad   : > { %3816 = vrsqrt.f32 %v2892_v8 }
0x18b7   : > { %v3817_v36 = vpop.eup %3816 }
0x18b8   : > { %v2894_v38 = vmul.f32 %v3817_v36, %v2886_v16 }
0x18ba   : > { %v2901_v40 = vmul.f32 %v3379_v37, %v2894_v38 }
0x18bc   : > { %v2908_v41 = vadd.f32 %v3380_v39, %v2901_v40 }
0x18be   : > { %3632 = vmatmul.mubr.msk.f32.vlgmr.msra.gmra.mrb[28].mxu0 %vm681_vm1, %v2908_v41 }
0x1991   : > { %v2982_v45 = vpop.f32.mrb[28].mxu0 }
0x1992   : > { %v2986_v46 = vmax.f32 %v2982_v45, 0.0  ;;  %v3633_v48 = vpop.f32.mrb[29].mxu0 }
0x1994   : > { %3651 = vmatmul.mubr.msk.f32.vlgmr.msra.gmra.mrb[26].mxu1 %vm2995_vm3, %v2986_v46 }
0x1a67   : > { %v3065_v50 = vpop.f32.mrb[26].mxu1 }
0x1a68   : > { %v3069_v51 = vadd.f32 %v3065_v50, %v2908_v41  ;;  %v3652_v52 = vpop.f32.mrb[27].mxu1 }
0x1a6a   : > { %v3072_v53 = vsel %vm681_vm1, %v3069_v51, 0.0 }
0x1a6b   : > { %3073 = vadd.xlane.f32.xlu0 %v3072_v53 }
0x1af8   : > { %v3074_v54 = vpop.xlane.xlu0 %3073 }
0x1af9   : > { %v3075_v55 = vmul.f32 0.03125, %v3074_v54 }
0x1afb   : > { %v4714_v56 = vsub.f32 %v3069_v51, %v3075_v55 }
0x1afd   : > { %v3077_v57 = vmul.f32 %v4714_v56, %v4714_v56 }
0x1aff   : > { %v3078_v58 = vsel %vm681_vm1, %v3077_v57, 0.0 }
0x1b00   : > { %3079 = vadd.xlane.f32.xlu0 %v3078_v58 }
0x1b16   : > { %1715 = vrot.lane.b32.xlu0 %v4487_v42, %s4089_s8  ;;  %v1722_v42 = vpop.permute.xlu1 %1721  ;;  %s4946_s8 = sld [smem:[#allocation24_spill]] }
0x1b1a   : > { %2871 = vrot.lane.b32.xlu0 %v4646_v47, %s4088_s1  ;;  %s4902_s1 = scalar_lea.vmem [#allocation13], %s4394_s29  ;;  %v2875_v63 = vpop.permute.xlu1 %2874 }
0x1b1b   : > { %s3150_s27 = sshll.u32 %s4902_s1, 4  ;;  %s4091_s1 = smov [#allocation11]   ;;  %s4751_s27 = int_to_ptr.vmem [resolvable:$true] %s3150_s27 }
0x1b1c   : > { %p4949_p13 = scmp.ne.s32.totalorder %s4946_s8, 0 }
0x1b1e   : > { %p3938_p6 = pnand %p3937_p2, %p4949_p13 }
0x1b20   : > { %p3939_p10 = pneg %p3938_p6 }
0x1b8d   : > { %v3080_v61 = vpop.xlane.xlu0 %3079 }
0x1b8e   : > { %v3081_v62 = vmul.f32 0.03125, %v3080_v61 }
0x1b90   : > { %v3082_v2 = vadd.f32 1e-05, %v3081_v62 }
0x1b91   : > { %v1716_v3 = vpop.permute.xlu0 %1715 }
0x1b92   : > { %3818 = vrsqrt.f32 %v3082_v2  ;;  %v1724_v47 = vsel %vm763_vm2, %v4462_v24, %v1716_v3  ;;  %v2877_v24 = vsel %vm763_vm2, %v4599_v5, %v2869_v60 }
0x1b93   : > { %v1726_v4 = vsel %vm1725_vm4, %v1724_v47, %v1719_v59 }
0x1b94   : > { %v1728_v6 = vsel %vm1727_vm5, %v1726_v4, %v1722_v42 }
0x1b95   : > { %v2872_v7 = vpop.permute.xlu0 %2871  ;;  %1729 = vst.msk [vmem:[%s667_s23] sm:$0xff] %vm681_vm1, %v1728_v6  ;;  %s3940_s23 = sshll.u32 %s4091_s1, 4  ;;  %s3941_s23 = int_to_ptr.vmem [resolvable:$false] %s3940_s23 }
0x1b96   : > { %v2878_v9 = vsel %vm1725_vm4, %v2877_v24, %v2872_v7  ;;  %s3942_s3 = scalar_lea.vmem %s3941_s23, 256  ;;  %p3943_p4 = scmp.lt.s32.totalorder %s4739_s20, %s3941_s23 }
0x1b97   : > { %p3944_p5 = scmp.lt.s32.totalorder %s3942_s3, %s3936_s15 }
0x1b99   : > { %p3945_p3 = por %p3944_p5, %p3943_p4 }
0x1b9b   : > { %p3946_p7 = pnand %p3945_p3, %p3939_p10 }
0x1b9d   : > { %3949 = shalt.err (!%p3946_p7)
}
0x1b9e   : > { %s3950_s0 = scalar_lea.hbm %s4737_s24, 128  ;;  %s3954_s1 = scalar_lea.hbm %s4947_s11, 256 }
0x1b9f   : > { %p3951_p1 = scmp.ne.s32.totalorder %s4737_s24, %s3950_s0  ;;  %p3955_p0 = scmp.lt.u32.totalorder %s4737_s24, %s4947_s11 }
0x1ba0   : > { %p3956_p9 = scmp.lt.u32.totalorder %s3954_s1, %s3950_s0  ;;  %p3958_p2 = scmp.lt.u32.totalorder %s3950_s0, %s4737_s24 }
0x1ba1   : > { %p3952_p8 = pnand %p3951_p1, %p4949_p13 }
0x1ba2   : > { %p3957_p12 = por %p3956_p9, %p3955_p0 }
0x1ba3   : > { %p3953_p11 = pneg %p3952_p8 }
0x1ba4   : > { %p3959_p6 = por %p3958_p2, %p3957_p12 }
0x1ba6   : > { %p3960_p10 = pnand %p3959_p6, %p3953_p11 }
0x1ba8   : > { %3963 = shalt.err (!%p3960_p10)
}
0x1ba9   : > { %3702 = dma.vmem_to_hbm [thread:$0]  (%p4949_p13), %s4739_s20, 128, %s4737_s24, %s4756_s18   ;;  %v2879_v5 = vsel %vm1727_vm5, %v2878_v9, %v2875_v63 }
0x1baa   : > { %s4950_s3 = scalar_lea.vmem [#allocation13], %s4394_s29  ;;  %s3964_s15 = scalar_lea.vmem %s4751_s27, 128 }
0x1bab   : > { %2880 = vst.msk [vmem:[%s4950_s3] sm:$0xff] %vm681_vm1, %v2879_v5  ;;  %p3965_p4 = scmp.ne.s32.totalorder %s4751_s27, %s3964_s15  ;;  %s4092_s0 = smov [#allocation13]  }
0x1bac   : > { %s3968_s21 = sshll.u32 %s4092_s0, 4  ;;  %s3969_s21 = int_to_ptr.vmem [resolvable:$false] %s3968_s21 }
0x1bad   : > { %p3966_p5 = pnand %p3965_p4, %p4949_p13  ;;  %s3970_s25 = scalar_lea.vmem %s3969_s21, 256 }
0x1bae   : > { %p3971_p7 = scmp.lt.s32.totalorder %s4751_s27, %s3969_s21  ;;  %p3972_p1 = scmp.lt.s32.totalorder %s3970_s25, %s3964_s15 }
0x1baf   : > { %p3967_p3 = pneg %p3966_p5 }
0x1bb0   : > { %p3973_p8 = por %p3972_p1, %p3971_p7 }
0x1bb2   : > { %p3974_p11 = pnand %p3973_p8, %p3967_p3 }
0x1bb4   : > { %3977 = shalt.err (!%p3974_p11)
}
0x1bb5   : > { %s3978_s20 = scalar_lea.hbm %s4749_s14, 128  ;;  %s3982_s2 = scalar_lea.hbm %s4948_s16, 256 }
0x1bb6   : > { %p3979_p0 = scmp.ne.s32.totalorder %s4749_s14, %s3978_s20  ;;  %p3983_p2 = scmp.lt.u32.totalorder %s4749_s14, %s4948_s16 }
0x1bb7   : > { %p3984_p6 = scmp.lt.u32.totalorder %s3982_s2, %s3978_s20  ;;  %p3986_p4 = scmp.lt.u32.totalorder %s3978_s20, %s4749_s14 }
0x1bb8   : > { %p3980_p9 = pnand %p3979_p0, %p4949_p13 }
0x1bb9   : > { %p3985_p10 = por %p3984_p6, %p3983_p2 }
0x1bba   : > { %p3981_p12 = pneg %p3980_p9 }
0x1bbb   : > { %p3987_p5 = por %p3986_p4, %p3985_p10 }
0x1bbd   : > { %p3988_p3 = pnand %p3987_p5, %p3981_p12 }
0x1bbf   : > { %3991 = shalt.err (!%p3988_p3)
}
0x1bc0   : > { %3703 = dma.vmem_to_hbm [thread:$0]  (%p4949_p13), %s4751_s27, 128, %s4749_s14, %s4756_s18   ;;  %v3819_v20 = vpop.eup %3818 }
0x1bc1   : > { %s4951_s21 = sld [smem:[#allocation35_spill]]  ;;  %v3084_v11 = vmul.f32 %v3819_v20, %v4714_v56  ;;  %s4952_s24 = sld [smem:[#allocation36_spill]] }
0x1bc2   : > { %s660_s1 = scalar_lea.vmem [#allocation10], %s4394_s29  ;;  %s4953_s4 = sld [smem:[#allocation37_spill]] }
0x1bc3   : > { %s3124_s2 = sshll.u32 %s660_s1, 4  ;;  %s3101_s27 = scalar_lea.sflag [#allocation4], %s4391_s22  ;;  %s4820_s2 = int_to_ptr.vmem [resolvable:$true] %s3124_s2 }
0x1bc4   : > { %s3992_s14 = scalar_lea.vmem %s4820_s2, 128  ;;  %s4093_s29 = smov [#allocation10]  }
0x1bc5   : > { %p3993_p7 = scmp.ne.s32.totalorder %s4820_s2, %s3992_s14  ;;  %s3996_s18 = sshll.u32 %s4093_s29, 4  ;;  %s3997_s18 = int_to_ptr.vmem [resolvable:$false] %s3996_s18 }
0x1bc6   : > { %s3998_s15 = scalar_lea.vmem %s3997_s18, 256  ;;  %p3999_p11 = scmp.lt.s32.totalorder %s4820_s2, %s3997_s18 }
0x1bc7   : > { %v3383_v10 = vld [vmem:[%s4951_s21] ss:$0 sm:$0xff]  ;;  %p3994_p1 = pnand %p3993_p7, %p4949_p13  ;;  %p4000_p0 = scmp.lt.s32.totalorder %s3998_s15, %s3992_s14 }
0x1bc8   : > { %v3384_v12 = vld [vmem:[%s4952_s24] ss:$0 sm:$0xff]  ;;  %v3091_v13 = vmul.f32 %v3383_v10, %v3084_v11  ;;  %s4818_s5 = scalar_lea.hbm %s4953_s4, %s4724_s17 }
0x1bc9   : > { %p3995_p8 = pneg %p3994_p1  ;;  %p4001_p9 = por %p4000_p0, %p3999_p11 }
0x1bca   : > { %v3098_v14 = vadd.f32 %v3384_v12, %v3091_v13 }
0x1bcb   : > { %p4002_p12 = pnand %p4001_p9, %p3995_p8 }
0x1bcc   : > { %3099 = vst.msk [vmem:[%s660_s1] sm:$0xff] %vm681_vm1, %v3098_v14 }
0x1bcd   : > { %4005 = shalt.err (!%p4002_p12)
}
0x1bce   : > { %s4006_s22 = scalar_lea.hbm %s4818_s5, 128  ;;  %s4010_s21 = scalar_lea.hbm %s4953_s4, 256 }
0x1bcf   : > { %p4007_p2 = scmp.ne.s32.totalorder %s4818_s5, %s4006_s22  ;;  %p4011_p4 = scmp.lt.u32.totalorder %s4818_s5, %s4953_s4 }
0x1bd0   : > { %p4012_p5 = scmp.lt.u32.totalorder %s4010_s21, %s4006_s22  ;;  %p4014_p7 = scmp.lt.u32.totalorder %s4006_s22, %s4818_s5 }
0x1bd1   : > { %p4008_p6 = pnand %p4007_p2, %p4949_p13 }
0x1bd2   : > { %p4013_p3 = por %p4012_p5, %p4011_p4 }
0x1bd3   : > { %p4009_p10 = pneg %p4008_p6 }
0x1bd4   : > { %p4015_p1 = por %p4014_p7, %p4013_p3 }
0x1bd6   : > { %p4016_p8 = pnand %p4015_p1, %p4009_p10 }
0x1bd8   : > { %4019 = shalt.err (!%p4016_p8)
}
0x1bd9   : > { %3701 = dma.vmem_to_hbm [thread:$0]  (%p4949_p13), %s4820_s2, 128, %s4818_s5, %s3101_s27  }
0x1bda PF: > { %s4954_s24 = sld [smem:[#allocation20_spill]]  ;;  %s4955_s1 = sld [smem:[#allocation22_spill]] }
0x1bdb   : > { %p4957_p0 = scmp.ge.s32.totalorder %s4074_s30, 2 }
0x1be0   : > { %s3162_s23 = sand.u32 1, %s4954_s24   ;;  %p4956_p11 = scmp.ne.s32.totalorder %s4955_s1, 0 }
0x1be1   : > { %s3163_s3 = scalar_lea.sflag [#allocation4], %s3162_s23 }
0x1be2   : > { %p3722_p9 = pnand %p4957_p0, %p4956_p11 }
0x1be4   : > { %4053 = dma.done.wait (!%p3722_p9), %s3163_s3, 128  }
0x1be5   : > { %4055 = vsyncadd (!%p3722_p9), %s3163_s3, 4294967168  ;;  %s4958_s14 = sadd.s32 4294967294, %s4074_s30  }
0x1be6   : > { %s3171_s29 = sand.u32 1, %s4958_s14  }
0x1be7   : > { %s3172_s18 = scalar_lea.sflag [#allocation12], %s3171_s29 }
0x1be8   : > { %4057 = dma.done.wait (!%p3722_p9), %s3172_s18, 256  }
0x1be9   : > { %4059 = vsyncadd (!%p3722_p9), %s3172_s18, 4294967040  ;;  %s4959_s30 = sld [smem:[#allocation23_spill]]  ;;  %s4960_s5 = sld [smem:[#allocation21_spill]] }
0x1bea   : > { %s4961_s29 = sld [smem:[#allocation25_spill]]  ;;  %s4962_s27 = smov %s4066_s28 }
0x1bef   : > { %p39_p13 = scmp.ge.s32.totalorder %s4959_s30, 4   ;;  %s4963_s28 = smov %s4960_s5 }
0x1bf1   :  { %41 = sbr.rel (!%p39_p13) target bundleno = 25 (0x19), region = 182 }
0x1bf8   :  { %3186 = vsyncpa [#allocation3], 1 }
0x1bf9   :  { %3188 = vsyncpa [#allocation3 + $0x1], 1 }
0x1bfa   :  { %3189 = vsyncpa [#allocation6], 1 }
0x1bfb   :  { %3191 = vsyncpa [#allocation6 + $0x1], 1 }
0x1bfc   :  { %3192 = vsyncpa [#allocation9], 1 }
0x1bfd   :  { %3193 = vsyncpa [#allocation4], 1 }
0x1bfe   :  { %3195 = vsyncpa [#allocation4 + $0x1], 1 }
0x1bff   :  { %3196 = vsyncpa [#allocation12], 1 }
0x1c00   :  { %3198 = vsyncpa [#allocation12 + $0x1], 1 }

</bundles_post_ra>
